<compile_context>
chip_gen: v6e
topology: v6e:2x2x1
jax: 0.10.0
libtpu: 0.0.40
codegen_flags: <defaults>
</compile_context>

<pallas_src>
import jax
import jax.numpy as jnp
from jax.experimental import pallas as pl
from jax.experimental.pallas import tpu as pltpu


def _exp_kernel(z_ref, o_ref):
    # Elementwise hot path: exp runs on the EUP; kernel is HBM-stream bound.
    o_ref[...] = jnp.exp(z_ref[...])


_SMALL_FAST_PATH_BYTES = 256 * 1024  # below this, plain jnp.exp is optimal


def _sublane_base(dtype):
    # Packed dtypes pack along sublanes: 8 for f32, 16 for bf16, 32 for int8/fp8.
    itemsize = jnp.dtype(dtype).itemsize
    return max(8, 32 // itemsize)


def normalizing_flow_forward(z):
    """forward(z) = exp(z), matching torch.exp semantics (elementwise, same shape/dtype)."""
    orig_shape = z.shape
    dtype = z.dtype
    itemsize = jnp.dtype(dtype).itemsize
    n = z.size

    # Fast path: tiny tensors are better served by XLA's fused exp.
    if n * itemsize < _SMALL_FAST_PATH_BYTES:
        return jnp.exp(z)

    # Pick the widest lane-dense layout that divides the element count.
    lanes = None
    for cand in (4096, 2048, 1024, 512, 256, 128):
        if n % cand == 0:
            lanes = cand
            break

    flat = z.reshape(-1)
    pad = 0
    if lanes is None:
        # Rare ragged case: pad to one full lane row (costs one extra copy).
        lanes = 128
        pad = (-n) % lanes
        flat = jnp.pad(flat, (0, pad))
    rows = flat.shape[0] // lanes
    slab = flat.reshape(rows, lanes)  # contiguous view, no data movement

    # Block sizing: target ~1 MiB per block, sublane-aligned for the dtype.
    sub = _sublane_base(dtype)
    target_rows = max(sub, ((1 << 20) // (lanes * itemsize)) // sub * sub)

    if target_rows >= rows:
        tile_rows = rows  # single full-extent block
    else:
        tile_rows = target_rows
    grid_rows = pl.cdiv(rows, tile_rows)

    # Prefer >= 2 grid steps so both v7x TensorCores get a share of the stream.
    if grid_rows == 1 and rows >= 2 * sub:
        tile_rows = pl.cdiv(pl.cdiv(rows, 2), sub) * sub
        grid_rows = pl.cdiv(rows, tile_rows)

    out_slab = pl.pallas_call(
        _exp_kernel,
        out_shape=jax.ShapeDtypeStruct((rows, lanes), dtype),
        grid_spec=pl.GridSpec(
            grid=(grid_rows,),
            in_specs=[pl.BlockSpec((tile_rows, lanes), lambda i: (i, 0))],
            out_specs=pl.BlockSpec((tile_rows, lanes), lambda i: (i, 0)),
        ),
        compiler_params=pltpu.CompilerParams(
            dimension_semantics=("parallel",),
        ),
    )(slab)

    out_flat = out_slab.reshape(-1)
    if pad:
        out_flat = out_flat[:n]
    return out_flat.reshape(orig_shape)


# Extra module methods (not the forward hot path, but trivial to provide):
def normalizing_flow_inverse(x):
    return jnp.log(x)


def normalizing_flow_log_det_jacobian(z):
    return z


if __name__ == "__main__":
    key = jax.random.PRNGKey(0)
    k1, k2 = jax.random.split(key)

    # Small latent batch consistent with the module -> fused-exp fast path.
    z_small = jax.random.normal(k1, (2, 4, 16, 16), dtype=jnp.float32)
    out_small = jax.block_until_ready(normalizing_flow_forward(z_small))
    assert out_small.shape == z_small.shape and out_small.dtype == z_small.dtype
    assert jnp.allclose(out_small, jnp.exp(z_small), rtol=1e-6, atol=1e-6)

    # Moderately larger input -> Pallas streaming kernel (lane-dense slab,
    # ~1 MiB blocks, multi-step parallel grid).
    z_big = jax.random.normal(k2, (8, 128, 1024), dtype=jnp.float32)  # 4 MiB
    out_big = jax.block_until_ready(normalizing_flow_forward(z_big))
    assert out_big.shape == z_big.shape and out_big.dtype == z_big.dtype
    assert jnp.allclose(out_big, jnp.exp(z_big), rtol=1e-6, atol=1e-6)

    print("KERNEL_OK")
</pallas_src>

<mosaic_0001>
module attributes {stable_mosaic.version = 11 : i64} {
  func.func @_exp_kernel(%arg0: i32, %arg1: memref<64x4096xf32, #tpu.memory_space<vmem>>, %arg2: memref<64x4096xf32, #tpu.memory_space<vmem>>) attributes {dimension_semantics = [#tpu.dimension_semantics<parallel>], iteration_bounds = array<i64: 4>, scalar_prefetch = 0 : i64, scratch_operands = 0 : i64, tpu.core_type = #tpu.core_type<tc>, window_params = [{transform_indices = @transform_0, window_bounds = array<i64: 64, 4096>}, {transform_indices = @transform_1, window_bounds = array<i64: 64, 4096>}]} {
    %c0 = arith.constant 0 : index
    %c0_0 = arith.constant 0 : index
    %0 = vector.load %arg1[%c0, %c0_0] : memref<64x4096xf32, #tpu.memory_space<vmem>>, vector<64x4096xf32>
    %1 = math.exp %0 : vector<64x4096xf32>
    %c0_1 = arith.constant 0 : index
    %c0_2 = arith.constant 0 : index
    %2 = vector.load %arg2[%c0_1, %c0_2] : memref<64x4096xf32, #tpu.memory_space<vmem>>, vector<64x4096xf32>
    tpu.vector_store %arg2[%c0_1, %c0_2], %1 {strides = array<i32>} : memref<64x4096xf32, #tpu.memory_space<vmem>>, vector<64x4096xf32>,
    return
  }
  func.func @transform_0(%arg0: i32) -> (i32, i32) {
    %c0_i32 = arith.constant 0 : i32
    %c0_i32_0 = arith.constant 0 : i32
    return %arg0, %c0_i32 : i32, i32
  }
  func.func @transform_1(%arg0: i32) -> (i32, i32) {
    %c0_i32 = arith.constant 0 : i32
    %c0_i32_0 = arith.constant 0 : i32
    return %arg0, %c0_i32 : i32, i32
  }
}

</mosaic_0001>

<bundles_post_ra>
// kernel: tpu_custom_call.1
= control target key start
LH: loop header
LB: loop body
LE: loop exit
PB: predicated region body
PF: predicated region fallthrough
CT: control target
= control target key end

     0   :  { %6 = vsyncpa [#allocation3], 0  ;;  %s2615_s0 = inlined_call_operand.hbm [shape: f32[256,4096], index: 0, kind: input, shape index: {}]   ;;  %s2616_s1 = inlined_call_operand.hbm [shape: f32[256,4096], index: 1, kind: output, shape index: {}]  }
   0x1   :  { %8 = vsyncpa [#allocation3 + $0x1], 0 }
   0x2   :  { %9 = vsyncpa [#allocation4], 0 }
   0x3   :  { %11 = vsyncpa [#allocation4 + $0x1], 0  ;;  %s1942_s6 = smov 0   ;;  %s1944_s7 = smov 0  }
   0x4   :  { %s1946_s8 = smov 0   ;;  %s1948_s9 = smov 0  }
   0x5 LB: > { %s1963_s10 = sadd.s32 4294967295, %s1924_s9   ;;  %s1250_s11 = sadd.s32 4294967294, %s1924_s9   ;;  %s1924_s9 = sphi %s1948_s9, %s2630_s9   ;;  %s1920_s8 = sphi %s1946_s8, %s2629_s8   ;;  %s1916_s7 = sphi %s1944_s7, %s2628_s7   ;;  %s1912_s6 = sphi %s1942_s6, %s2627_s6  }
   0x6   : > { %s1967_s12 = sadd.s32 1, %s1924_s9   ;;  %s24_s13 = sadd.s32 1, %s1920_s8 }
   0x7   : > { %s21_s14 = ssub.s32 %s1924_s9, %s1967_s12  ;;  %p31_p0 = scmp.ne.s32.totalorder %s1920_s8, %s1916_s7 }
   0x8   : > { %p22_p1 = scmp.eq.s32.totalorder %s21_s14, 0  ;;  %p32_p2 = scmp.eq.s32.totalorder %s1924_s9, 0 }
   0x9   : > { %p37_p3 = scmp.ne.s32.totalorder %s1916_s7, %s1912_s6  ;;  %p38_p4 = scmp.eq.s32.totalorder %s1963_s10, 0 }
   0xa   : > { %s1979_s15 = scalar_select %p22_p1, %s1920_s8, %s24_s13  }
   0xb   : > { %p1981_p5 = por %p32_p2, %p31_p0  ;;  %p1985_p6 = por %p38_p4, %p37_p3 }
   0xc   : > { %p61_p7 = scmp.eq.s32.totalorder %s1963_s10, 3  ;;  %p67_p8 = scmp.eq.s32.totalorder %s1250_s11, 3 }
   0xd   : > { %s2620_s17 = scalar_select %p1985_p6, 1, 0 }
   0xe   : > { %p1282_p9 = scmp.lt.s32.totalorder %s1924_s9, 4  ;;  %p1991_p10 = por %p61_p7, %p31_p0 }
   0xf   : > { %p1995_p11 = por %p67_p8, %p37_p3  ;;  %s87_s20 = sand.u32 1, %s1920_s8  }
  0x10   : > { %s2621_s18 = scalar_select %p1991_p10, 1, 0 }
  0x11   : > { %s2622_s19 = scalar_select %p1995_p11, 1, 0 }
  0x12   : > { %s1267_s21 = sshll.u32 %s1924_s9, 15  ;;  %s1253_s22 = sshll.u32 %s87_s20, 11 }
  0x13   : > { %s2004_s25 = scalar_lea.hbm %s2615_s0, %s1267_s21  ;;  %s91_s26 = scalar_lea.vmem [#allocation2], %s1253_s22 }
  0x14   : > { %s99_s27 = sshll.u32 %s91_s26, 4  ;;  %p2008_p12 = pnand %p1282_p9, %p1981_p5  ;;  %s2012_s27 = int_to_ptr.vmem [resolvable:$true] %s99_s27 }
  0x15   : > { %s2014_s29 = scalar_lea.sflag [#allocation3], %s87_s20  ;;  %s1832_s30 = scalar_lea.hbm %s2004_s25, 32768 }
  0x16   : > { %p1833_p13 = scmp.ne.s32.totalorder %s2004_s25, %s1832_s30  ;;  %p1834_p0 = pneg %p2008_p12 }
  0x17   : > { %s1837_s4 = scalar_lea.hbm %s2615_s0, 131072  ;;  %p1838_p3 = scmp.lt.s32.totalorder %s2004_s25, %s2615_s0 }
  0x18   : > { %p1835_p1 = pnand %p1834_p0, %p1833_p13  ;;  %p1839_p4 = scmp.lt.s32.totalorder %s1837_s4, %s1832_s30 }
  0x1a   : > { %p1836_p2 = pneg %p1835_p1  ;;  %p1840_p5 = por %p1839_p4, %p1838_p3 }
  0x1c   : > { %p1841_p7 = pnand %p1840_p5, %p1836_p2 }
  0x1e   : > { %1844 = shalt.err (!%p1841_p7)
}
  0x1f   : > { %s1845_s13 = scalar_lea.vmem %s2012_s27, 32768  ;;  %s1926_s14 = smov [#allocation2]  }
  0x20   : > { %p1846_p8 = scmp.ne.s32.totalorder %s2012_s27, %s1845_s13  ;;  %s1850_s16 = sshll.u32 %s1926_s14, 4  ;;  %s1851_s16 = int_to_ptr.vmem [resolvable:$false] %s1850_s16 }
  0x21   : > { %s1852_s20 = scalar_lea.vmem %s1851_s16, 65536  ;;  %p1853_p1 = scmp.lt.s32.totalorder %s2012_s27, %s1851_s16 }
  0x22   : > { %p1848_p9 = pnand %p1846_p8, %p1834_p0  ;;  %p1854_p11 = scmp.lt.s32.totalorder %s1852_s20, %s1845_s13 }
  0x24   : > { %p1849_p13 = pneg %p1848_p9  ;;  %p1855_p10 = por %p1854_p11, %p1853_p1 }
  0x26   : > { %p1856_p6 = pnand %p1855_p10, %p1849_p13 }
  0x28   : > { %1859 = shalt.err (!%p1856_p6)
}
  0x29   : > { %s1927_s21 = smov 4096   ;;  %s1928_s22 = smov 256  }
  0x2a   : > { %1277 = dma.hbm_to_vmem [thread:$0]  (!%p2008_p12), %s2004_s25, 32768, %s2012_s27, %s2014_s29, %s1927_s21, %s1927_s21, %s1928_s22  }
  0x2b   : > { %p1257_p0 = scmp.ge.s32.totalorder %s1924_s9, 1  ;;  %p107_p2 = scmp.lt.s32.totalorder %s1924_s9, 5 }
  0x2d   : > { %p108_p3 = pnand %p1257_p0, %p107_p2 }
  0x2e   : > { %s2038_s23 = sand.u32 (!%p108_p3), 1, %s1916_s7   ;;  %p2624_p6 = scmp.ne.s32.totalorder (!%p108_p3), %s2620_s17, 0 }
  0x2f   : > { %111 = sbr.rel (%p108_p3) target bundleno = 339 (0x153), region = 24  ;;  %s1258_s24 = sshll.u32 (!%p108_p3), %s2038_s23, 11 }
  0x30   : > { %s114_s26 = scalar_lea.sflag (!%p108_p3), [#allocation3], %s2038_s23  ;;  %s2044_s30 = scalar_lea.vmem (!%p108_p3), [#allocation2], %s1258_s24 }
  0x34   : > { %1903 = dma.done.wait (%p2624_p6), %s114_s26, 32768  }
  0x35   : > { %1905 = vsyncadd (%p2624_p6), %s114_s26, 4294934528  ;;  %v138_v0 = vld [vmem:[%s2044_s30] sm:$0xff]  ;;  %v139_v1 = vld [vmem:[%s2044_s30 + $0x8] sm:$0xff]  ;;  %s2073_s17 = scalar_lea.vmem [#allocation5], %s1258_s24  ;;  %s1269_s25 = sshll.u32 %s1963_s10, 15 }
  0x36   : > { %v140_v2 = vld [vmem:[%s2044_s30 + $0x10] sm:$0xff]  ;;  %v394_v3 = vmul.f32 1.442695, %v138_v0  ;;  %v396_v4 = vmul.f32 1.442695, %v139_v1  ;;  %v141_v6 = vld [vmem:[%s2044_s30 + $0x18] sm:$0xff]  ;;  %s2568_s2 = scalar_lea.hbm %s2616_s1, %s1269_s25 }
  0x37   : > { %v398_v5 = vmul.f32 1.442695, %v140_v2  ;;  %v142_v7 = vld [vmem:[%s2044_s30 + $0x20] sm:$0xff]  ;;  %v143_v8 = vld [vmem:[%s2044_s30 + $0x28] sm:$0xff]  ;;  %v400_v9 = vmul.f32 1.442695, %v141_v6 }
  0x38   : > { %1320 = vpow2.f32 %v394_v3  ;;  %v402_v10 = vmul.f32 1.442695, %v142_v7  ;;  %v404_v11 = vmul.f32 1.442695, %v143_v8  ;;  %v144_v12 = vld [vmem:[%s2044_s30 + $0x30] sm:$0xff]  ;;  %v145_v13 = vld [vmem:[%s2044_s30 + $0x38] sm:$0xff] }
  0x39   : > { %1322 = vpow2.f32 %v396_v4  ;;  %v146_v14 = vld [vmem:[%s2044_s30 + $0x40] sm:$0xff]  ;;  %v406_v15 = vmul.f32 1.442695, %v144_v12  ;;  %v408_v16 = vmul.f32 1.442695, %v145_v13  ;;  %v147_v17 = vld [vmem:[%s2044_s30 + $0x48] sm:$0xff] }
  0x3a   : > { %1324 = vpow2.f32 %v398_v5  ;;  %v148_v18 = vld [vmem:[%s2044_s30 + $0x50] sm:$0xff]  ;;  %v410_v19 = vmul.f32 1.442695, %v146_v14  ;;  %v149_v20 = vld [vmem:[%s2044_s30 + $0x58] sm:$0xff]  ;;  %v412_v21 = vmul.f32 1.442695, %v147_v17 }
  0x3b   : > { %1326 = vpow2.f32 %v400_v9  ;;  %v150_v22 = vld [vmem:[%s2044_s30 + $0x60] sm:$0xff]  ;;  %v414_v23 = vmul.f32 1.442695, %v148_v18  ;;  %v151_v24 = vld [vmem:[%s2044_s30 + $0x68] sm:$0xff]  ;;  %v416_v25 = vmul.f32 1.442695, %v149_v20 }
  0x3c   : > { %1328 = vpow2.f32 %v402_v10  ;;  %v152_v26 = vld [vmem:[%s2044_s30 + $0x70] sm:$0xff]  ;;  %v418_v27 = vmul.f32 1.442695, %v150_v22  ;;  %v153_v28 = vld [vmem:[%s2044_s30 + $0x78] sm:$0xff]  ;;  %v420_v29 = vmul.f32 1.442695, %v151_v24 }
  0x3d   : > { %1330 = vpow2.f32 %v404_v11  ;;  %v154_v30 = vld [vmem:[%s2044_s30 + $0x80] sm:$0xff]  ;;  %v422_v31 = vmul.f32 1.442695, %v152_v26  ;;  %v155_v32 = vld [vmem:[%s2044_s30 + $0x88] sm:$0xff]  ;;  %v424_v33 = vmul.f32 1.442695, %v153_v28 }
  0x3e   : > { %1332 = vpow2.f32 %v406_v15  ;;  %v156_v34 = vld [vmem:[%s2044_s30 + $0x90] sm:$0xff]  ;;  %v426_v35 = vmul.f32 1.442695, %v154_v30  ;;  %v157_v36 = vld [vmem:[%s2044_s30 + $0x98] sm:$0xff]  ;;  %v428_v38 = vmul.f32 1.442695, %v155_v32 }
  0x3f   : > { %1334 = vpow2.f32 %v408_v16  ;;  %v158_v39 = vld [vmem:[%s2044_s30 + $0xa0] sm:$0xff]  ;;  %v430_v41 = vmul.f32 1.442695, %v156_v34  ;;  %v159_v42 = vld [vmem:[%s2044_s30 + $0xa8] sm:$0xff]  ;;  %v432_v44 = vmul.f32 1.442695, %v157_v36 }
  0x40   : > { %1336 = vpow2.f32 %v410_v19  ;;  %v160_v45 = vld [vmem:[%s2044_s30 + $0xb0] sm:$0xff]  ;;  %v434_v47 = vmul.f32 1.442695, %v158_v39  ;;  %v161_v48 = vld [vmem:[%s2044_s30 + $0xb8] sm:$0xff]  ;;  %v436_v50 = vmul.f32 1.442695, %v159_v42 }
  0x41   : > { %1338 = vpow2.f32 %v412_v21  ;;  %v162_v51 = vld [vmem:[%s2044_s30 + $0xc0] sm:$0xff]  ;;  %v438_v53 = vmul.f32 1.442695, %v160_v45  ;;  %v163_v54 = vld [vmem:[%s2044_s30 + $0xc8] sm:$0xff]  ;;  %v440_v56 = vmul.f32 1.442695, %v161_v48 }
  0x42   : > { %1340 = vpow2.f32 %v414_v23  ;;  %v164_v57 = vld [vmem:[%s2044_s30 + $0xd0] sm:$0xff]  ;;  %v442_v59 = vmul.f32 1.442695, %v162_v51  ;;  %v165_v60 = vld [vmem:[%s2044_s30 + $0xd8] sm:$0xff]  ;;  %v444_v62 = vmul.f32 1.442695, %v163_v54 }
  0x43   : > { %1342 = vpow2.f32 %v416_v25  ;;  %v166_v63 = vld [vmem:[%s2044_s30 + $0xe0] sm:$0xff]  ;;  %v446_v1 = vmul.f32 1.442695, %v164_v57  ;;  %v167_v2 = vld [vmem:[%s2044_s30 + $0xe8] sm:$0xff]  ;;  %v448_v4 = vmul.f32 1.442695, %v165_v60 }
  0x44   : > { %1344 = vpow2.f32 %v418_v27  ;;  %v168_v5 = vld [vmem:[%s2044_s30 + $0xf0] sm:$0xff]  ;;  %v450_v7 = vmul.f32 1.442695, %v166_v63  ;;  %v169_v8 = vld [vmem:[%s2044_s30 + $0xf8] sm:$0xff]  ;;  %v452_v10 = vmul.f32 1.442695, %v167_v2 }
  0x45   : > { %v1321_v37 = vpop.eup %1320  ;;  %1346 = vpow2.f32 %v420_v29  ;;  %v170_v11 = vld [vmem:[%s2044_s30 + $0x100] sm:$0xff]  ;;  %v454_v13 = vmul.f32 1.442695, %v168_v5  ;;  %v171_v14 = vld [vmem:[%s2044_s30 + $0x108] sm:$0xff]  ;;  %v456_v16 = vmul.f32 1.442695, %v169_v8 }
  0x46   : > { %v1323_v40 = vpop.eup %1322  ;;  %906 = vst [vmem:[%s2073_s17] sm:$0xff] %v1321_v37  ;;  %1348 = vpow2.f32 %v422_v31  ;;  %v172_v17 = vld [vmem:[%s2044_s30 + $0x110] sm:$0xff]  ;;  %v458_v19 = vmul.f32 1.442695, %v170_v11  ;;  %v173_v20 = vld [vmem:[%s2044_s30 + $0x118] sm:$0xff]  ;;  %v460_v22 = vmul.f32 1.442695, %v171_v14 }
  0x47   : > { %v1325_v43 = vpop.eup %1324  ;;  %907 = vst [vmem:[%s2073_s17 + $0x8] sm:$0xff] %v1323_v40  ;;  %1350 = vpow2.f32 %v424_v33  ;;  %v174_v23 = vld [vmem:[%s2044_s30 + $0x120] sm:$0xff]  ;;  %v462_v25 = vmul.f32 1.442695, %v172_v17  ;;  %v175_v26 = vld [vmem:[%s2044_s30 + $0x128] sm:$0xff]  ;;  %v176_v29 = vld [vmem:[%s2044_s30 + $0x130] sm:$0xff] }
  0x48   : > { %v1327_v46 = vpop.eup %1326  ;;  %908 = vst [vmem:[%s2073_s17 + $0x10] sm:$0xff] %v1325_v43  ;;  %1352 = vpow2.f32 %v426_v35  ;;  %v464_v28 = vmul.f32 1.442695, %v173_v20  ;;  %v466_v31 = vmul.f32 1.442695, %v174_v23  ;;  %v177_v32 = vld [vmem:[%s2044_s30 + $0x138] sm:$0xff] }
  0x49   : > { %v1329_v49 = vpop.eup %1328  ;;  %909 = vst [vmem:[%s2073_s17 + $0x18] sm:$0xff] %v1327_v46  ;;  %1354 = vpow2.f32 %v428_v38  ;;  %v468_v34 = vmul.f32 1.442695, %v175_v26  ;;  %v178_v35 = vld [vmem:[%s2044_s30 + $0x140] sm:$0xff]  ;;  %v470_v37 = vmul.f32 1.442695, %v176_v29 }
  0x4a   : > { %v1331_v52 = vpop.eup %1330  ;;  %910 = vst [vmem:[%s2073_s17 + $0x20] sm:$0xff] %v1329_v49  ;;  %1356 = vpow2.f32 %v430_v41  ;;  %v179_v38 = vld [vmem:[%s2044_s30 + $0x148] sm:$0xff]  ;;  %v472_v40 = vmul.f32 1.442695, %v177_v32  ;;  %v180_v41 = vld [vmem:[%s2044_s30 + $0x150] sm:$0xff]  ;;  %s1177_s27 = sshll.u32 %s2073_s17, 4  ;;  %s2571_s27 = int_to_ptr.vmem [resolvable:$true] %s1177_s27 }
  0x4b   : > { %v1333_v55 = vpop.eup %1332  ;;  %911 = vst [vmem:[%s2073_s17 + $0x28] sm:$0xff] %v1331_v52  ;;  %1358 = vpow2.f32 %v432_v44  ;;  %v474_v43 = vmul.f32 1.442695, %v178_v35  ;;  %v181_v44 = vld [vmem:[%s2044_s30 + $0x158] sm:$0xff]  ;;  %v476_v46 = vmul.f32 1.442695, %v179_v38 }
  0x4c   : > { %v1335_v58 = vpop.eup %1334  ;;  %912 = vst [vmem:[%s2073_s17 + $0x30] sm:$0xff] %v1333_v55  ;;  %1360 = vpow2.f32 %v434_v47  ;;  %v182_v47 = vld [vmem:[%s2044_s30 + $0x160] sm:$0xff]  ;;  %v478_v49 = vmul.f32 1.442695, %v180_v41  ;;  %v480_v52 = vmul.f32 1.442695, %v181_v44 }
  0x4d   : > { %v1337_v61 = vpop.eup %1336  ;;  %913 = vst [vmem:[%s2073_s17 + $0x38] sm:$0xff] %v1335_v58  ;;  %1362 = vpow2.f32 %v436_v50  ;;  %v183_v50 = vld [vmem:[%s2044_s30 + $0x168] sm:$0xff]  ;;  %v482_v55 = vmul.f32 1.442695, %v182_v47  ;;  %s1163_s10 = scalar_lea.sflag [#allocation4], %s2038_s23  ;;  %s1860_s3 = scalar_lea.vmem %s2571_s27, 32768 }
  0x4e   : > { %v1339_v0 = vpop.eup %1338  ;;  %914 = vst [vmem:[%s2073_s17 + $0x40] sm:$0xff] %v1337_v61  ;;  %1364 = vpow2.f32 %v438_v53  ;;  %v184_v53 = vld [vmem:[%s2044_s30 + $0x170] sm:$0xff]  ;;  %v484_v58 = vmul.f32 1.442695, %v183_v50  ;;  %p1861_p10 = scmp.ne.s32.totalorder %s2571_s27, %s1860_s3  ;;  %p2625_p11 = scmp.ne.s32.totalorder %s2621_s18, 0 }
  0x4f   : > { %v1341_v3 = vpop.eup %1340  ;;  %915 = vst [vmem:[%s2073_s17 + $0x48] sm:$0xff] %v1339_v0  ;;  %1366 = vpow2.f32 %v440_v56  ;;  %v185_v56 = vld [vmem:[%s2044_s30 + $0x178] sm:$0xff]  ;;  %v486_v61 = vmul.f32 1.442695, %v184_v53  ;;  %s1929_s4 = smov [#allocation5]  }
  0x50   : > { %v1343_v6 = vpop.eup %1342  ;;  %916 = vst [vmem:[%s2073_s17 + $0x50] sm:$0xff] %v1341_v3  ;;  %1368 = vpow2.f32 %v442_v59  ;;  %v186_v59 = vld [vmem:[%s2044_s30 + $0x180] sm:$0xff]  ;;  %v488_v0 = vmul.f32 1.442695, %v185_v56  ;;  %p1862_p12 = pnand %p1861_p10, %p2625_p11  ;;  %s1864_s5 = sshll.u32 %s1929_s4, 4  ;;  %s1865_s5 = int_to_ptr.vmem [resolvable:$false] %s1864_s5 }
  0x51   : > { %v1345_v9 = vpop.eup %1344  ;;  %917 = vst [vmem:[%s2073_s17 + $0x58] sm:$0xff] %v1343_v6  ;;  %1370 = vpow2.f32 %v444_v62  ;;  %v187_v62 = vld [vmem:[%s2044_s30 + $0x188] sm:$0xff]  ;;  %v490_v3 = vmul.f32 1.442695, %v186_v59  ;;  %s1866_s11 = scalar_lea.vmem %s1865_s5, 65536  ;;  %p1867_p5 = scmp.lt.s32.totalorder %s2571_s27, %s1865_s5 }
  0x52   : > { %v1347_v12 = vpop.eup %1346  ;;  %918 = vst [vmem:[%s2073_s17 + $0x60] sm:$0xff] %v1345_v9  ;;  %1372 = vpow2.f32 %v446_v1  ;;  %v188_v1 = vld [vmem:[%s2044_s30 + $0x190] sm:$0xff]  ;;  %v492_v6 = vmul.f32 1.442695, %v187_v62  ;;  %p1863_p4 = pneg %p1862_p12  ;;  %p1868_p7 = scmp.lt.s32.totalorder %s1866_s11, %s1860_s3 }
  0x53   : > { %v1349_v15 = vpop.eup %1348  ;;  %919 = vst [vmem:[%s2073_s17 + $0x68] sm:$0xff] %v1347_v12  ;;  %1374 = vpow2.f32 %v448_v4  ;;  %v189_v4 = vld [vmem:[%s2044_s30 + $0x198] sm:$0xff]  ;;  %v494_v9 = vmul.f32 1.442695, %v188_v1 }
  0x54   : > { %v1351_v18 = vpop.eup %1350  ;;  %920 = vst [vmem:[%s2073_s17 + $0x70] sm:$0xff] %v1349_v15  ;;  %1376 = vpow2.f32 %v450_v7  ;;  %v190_v7 = vld [vmem:[%s2044_s30 + $0x1a0] sm:$0xff]  ;;  %v496_v12 = vmul.f32 1.442695, %v189_v4  ;;  %p1869_p8 = por %p1868_p7, %p1867_p5 }
  0x55   : > { %v1353_v21 = vpop.eup %1352  ;;  %921 = vst [vmem:[%s2073_s17 + $0x78] sm:$0xff] %v1351_v18  ;;  %1378 = vpow2.f32 %v452_v10  ;;  %v191_v10 = vld [vmem:[%s2044_s30 + $0x1a8] sm:$0xff]  ;;  %v498_v15 = vmul.f32 1.442695, %v190_v7 }
  0x56   : > { %v1355_v24 = vpop.eup %1354  ;;  %922 = vst [vmem:[%s2073_s17 + $0x80] sm:$0xff] %v1353_v21  ;;  %1380 = vpow2.f32 %v454_v13  ;;  %v192_v13 = vld [vmem:[%s2044_s30 + $0x1b0] sm:$0xff]  ;;  %v500_v18 = vmul.f32 1.442695, %v191_v10  ;;  %p1870_p9 = pnand %p1869_p8, %p1863_p4 }
  0x57   : > { %v1357_v27 = vpop.eup %1356  ;;  %923 = vst [vmem:[%s2073_s17 + $0x88] sm:$0xff] %v1355_v24  ;;  %1382 = vpow2.f32 %v456_v16  ;;  %v193_v16 = vld [vmem:[%s2044_s30 + $0x1b8] sm:$0xff]  ;;  %v502_v21 = vmul.f32 1.442695, %v192_v13 }
  0x58   : > { %v1359_v30 = vpop.eup %1358  ;;  %924 = vst [vmem:[%s2073_s17 + $0x90] sm:$0xff] %v1357_v27  ;;  %1384 = vpow2.f32 %v458_v19  ;;  %v194_v19 = vld [vmem:[%s2044_s30 + $0x1c0] sm:$0xff]  ;;  %v504_v24 = vmul.f32 1.442695, %v193_v16 }
  0x59   : > { %v1361_v33 = vpop.eup %1360  ;;  %925 = vst [vmem:[%s2073_s17 + $0x98] sm:$0xff] %v1359_v30  ;;  %1386 = vpow2.f32 %v460_v22  ;;  %v195_v22 = vld [vmem:[%s2044_s30 + $0x1c8] sm:$0xff]  ;;  %v506_v27 = vmul.f32 1.442695, %v194_v19 }
  0x5a   : > { %v1363_v36 = vpop.eup %1362  ;;  %926 = vst [vmem:[%s2073_s17 + $0xa0] sm:$0xff] %v1361_v33  ;;  %1388 = vpow2.f32 %v462_v25  ;;  %v196_v25 = vld [vmem:[%s2044_s30 + $0x1d0] sm:$0xff]  ;;  %v508_v30 = vmul.f32 1.442695, %v195_v22 }
  0x5b   : > { %v1365_v39 = vpop.eup %1364  ;;  %927 = vst [vmem:[%s2073_s17 + $0xa8] sm:$0xff] %v1363_v36  ;;  %1390 = vpow2.f32 %v464_v28  ;;  %v197_v28 = vld [vmem:[%s2044_s30 + $0x1d8] sm:$0xff]  ;;  %v510_v33 = vmul.f32 1.442695, %v196_v25 }
  0x5c   : > { %v1367_v42 = vpop.eup %1366  ;;  %928 = vst [vmem:[%s2073_s17 + $0xb0] sm:$0xff] %v1365_v39  ;;  %1392 = vpow2.f32 %v466_v31  ;;  %v198_v31 = vld [vmem:[%s2044_s30 + $0x1e0] sm:$0xff]  ;;  %v512_v36 = vmul.f32 1.442695, %v197_v28 }
  0x5d   : > { %v1369_v45 = vpop.eup %1368  ;;  %929 = vst [vmem:[%s2073_s17 + $0xb8] sm:$0xff] %v1367_v42  ;;  %1394 = vpow2.f32 %v468_v34  ;;  %v199_v34 = vld [vmem:[%s2044_s30 + $0x1e8] sm:$0xff]  ;;  %v514_v39 = vmul.f32 1.442695, %v198_v31 }
  0x5e   : > { %v1371_v48 = vpop.eup %1370  ;;  %930 = vst [vmem:[%s2073_s17 + $0xc0] sm:$0xff] %v1369_v45  ;;  %1396 = vpow2.f32 %v470_v37  ;;  %v200_v37 = vld [vmem:[%s2044_s30 + $0x1f0] sm:$0xff]  ;;  %v516_v42 = vmul.f32 1.442695, %v199_v34 }
  0x5f   : > { %v1373_v51 = vpop.eup %1372  ;;  %931 = vst [vmem:[%s2073_s17 + $0xc8] sm:$0xff] %v1371_v48  ;;  %1398 = vpow2.f32 %v472_v40  ;;  %v201_v40 = vld [vmem:[%s2044_s30 + $0x1f8] sm:$0xff]  ;;  %v518_v45 = vmul.f32 1.442695, %v200_v37 }
  0x60   : > { %v1375_v54 = vpop.eup %1374  ;;  %932 = vst [vmem:[%s2073_s17 + $0xd0] sm:$0xff] %v1373_v51  ;;  %1400 = vpow2.f32 %v474_v43  ;;  %v202_v43 = vld [vmem:[%s2044_s30 + $0x200] sm:$0xff]  ;;  %v520_v48 = vmul.f32 1.442695, %v201_v40 }
  0x61   : > { %v1377_v57 = vpop.eup %1376  ;;  %933 = vst [vmem:[%s2073_s17 + $0xd8] sm:$0xff] %v1375_v54  ;;  %1402 = vpow2.f32 %v476_v46  ;;  %v203_v46 = vld [vmem:[%s2044_s30 + $0x208] sm:$0xff]  ;;  %v522_v51 = vmul.f32 1.442695, %v202_v43 }
  0x62   : > { %v1379_v60 = vpop.eup %1378  ;;  %934 = vst [vmem:[%s2073_s17 + $0xe0] sm:$0xff] %v1377_v57  ;;  %1404 = vpow2.f32 %v478_v49  ;;  %v204_v49 = vld [vmem:[%s2044_s30 + $0x210] sm:$0xff]  ;;  %v524_v54 = vmul.f32 1.442695, %v203_v46 }
  0x63   : > { %v1381_v63 = vpop.eup %1380  ;;  %935 = vst [vmem:[%s2073_s17 + $0xe8] sm:$0xff] %v1379_v60  ;;  %1406 = vpow2.f32 %v480_v52  ;;  %v205_v52 = vld [vmem:[%s2044_s30 + $0x218] sm:$0xff]  ;;  %v526_v57 = vmul.f32 1.442695, %v204_v49 }
  0x64   : > { %v1383_v2 = vpop.eup %1382  ;;  %936 = vst [vmem:[%s2073_s17 + $0xf0] sm:$0xff] %v1381_v63  ;;  %1408 = vpow2.f32 %v482_v55  ;;  %v206_v55 = vld [vmem:[%s2044_s30 + $0x220] sm:$0xff]  ;;  %v528_v60 = vmul.f32 1.442695, %v205_v52 }
  0x65   : > { %v1385_v5 = vpop.eup %1384  ;;  %937 = vst [vmem:[%s2073_s17 + $0xf8] sm:$0xff] %v1383_v2  ;;  %1410 = vpow2.f32 %v484_v58  ;;  %v207_v58 = vld [vmem:[%s2044_s30 + $0x228] sm:$0xff]  ;;  %v530_v63 = vmul.f32 1.442695, %v206_v55 }
  0x66   : > { %v1387_v8 = vpop.eup %1386  ;;  %938 = vst [vmem:[%s2073_s17 + $0x100] sm:$0xff] %v1385_v5  ;;  %1412 = vpow2.f32 %v486_v61  ;;  %v208_v61 = vld [vmem:[%s2044_s30 + $0x230] sm:$0xff]  ;;  %v532_v2 = vmul.f32 1.442695, %v207_v58 }
  0x67   : > { %v1389_v11 = vpop.eup %1388  ;;  %939 = vst [vmem:[%s2073_s17 + $0x108] sm:$0xff] %v1387_v8  ;;  %1414 = vpow2.f32 %v488_v0  ;;  %v209_v0 = vld [vmem:[%s2044_s30 + $0x238] sm:$0xff]  ;;  %v534_v5 = vmul.f32 1.442695, %v208_v61 }
  0x68   : > { %v1391_v14 = vpop.eup %1390  ;;  %940 = vst [vmem:[%s2073_s17 + $0x110] sm:$0xff] %v1389_v11  ;;  %1416 = vpow2.f32 %v490_v3  ;;  %v210_v3 = vld [vmem:[%s2044_s30 + $0x240] sm:$0xff]  ;;  %v536_v8 = vmul.f32 1.442695, %v209_v0 }
  0x69   : > { %v1393_v17 = vpop.eup %1392  ;;  %941 = vst [vmem:[%s2073_s17 + $0x118] sm:$0xff] %v1391_v14  ;;  %1418 = vpow2.f32 %v492_v6  ;;  %v211_v6 = vld [vmem:[%s2044_s30 + $0x248] sm:$0xff]  ;;  %v538_v11 = vmul.f32 1.442695, %v210_v3 }
  0x6a   : > { %v1395_v20 = vpop.eup %1394  ;;  %942 = vst [vmem:[%s2073_s17 + $0x120] sm:$0xff] %v1393_v17  ;;  %1420 = vpow2.f32 %v494_v9  ;;  %v212_v9 = vld [vmem:[%s2044_s30 + $0x250] sm:$0xff]  ;;  %v540_v14 = vmul.f32 1.442695, %v211_v6 }
  0x6b   : > { %v1397_v23 = vpop.eup %1396  ;;  %943 = vst [vmem:[%s2073_s17 + $0x128] sm:$0xff] %v1395_v20  ;;  %1422 = vpow2.f32 %v496_v12  ;;  %v213_v12 = vld [vmem:[%s2044_s30 + $0x258] sm:$0xff]  ;;  %v542_v17 = vmul.f32 1.442695, %v212_v9 }
  0x6c   : > { %v1399_v26 = vpop.eup %1398  ;;  %944 = vst [vmem:[%s2073_s17 + $0x130] sm:$0xff] %v1397_v23  ;;  %1424 = vpow2.f32 %v498_v15  ;;  %v214_v15 = vld [vmem:[%s2044_s30 + $0x260] sm:$0xff]  ;;  %v544_v20 = vmul.f32 1.442695, %v213_v12 }
  0x6d   : > { %v1401_v29 = vpop.eup %1400  ;;  %945 = vst [vmem:[%s2073_s17 + $0x138] sm:$0xff] %v1399_v26  ;;  %1426 = vpow2.f32 %v500_v18  ;;  %v215_v18 = vld [vmem:[%s2044_s30 + $0x268] sm:$0xff]  ;;  %v546_v23 = vmul.f32 1.442695, %v214_v15 }
  0x6e   : > { %v1403_v32 = vpop.eup %1402  ;;  %946 = vst [vmem:[%s2073_s17 + $0x140] sm:$0xff] %v1401_v29  ;;  %1428 = vpow2.f32 %v502_v21  ;;  %v216_v21 = vld [vmem:[%s2044_s30 + $0x270] sm:$0xff]  ;;  %v548_v26 = vmul.f32 1.442695, %v215_v18 }
  0x6f   : > { %v1405_v35 = vpop.eup %1404  ;;  %947 = vst [vmem:[%s2073_s17 + $0x148] sm:$0xff] %v1403_v32  ;;  %1430 = vpow2.f32 %v504_v24  ;;  %v217_v24 = vld [vmem:[%s2044_s30 + $0x278] sm:$0xff]  ;;  %v550_v29 = vmul.f32 1.442695, %v216_v21 }
  0x70   : > { %v1407_v38 = vpop.eup %1406  ;;  %948 = vst [vmem:[%s2073_s17 + $0x150] sm:$0xff] %v1405_v35  ;;  %1432 = vpow2.f32 %v506_v27  ;;  %v218_v27 = vld [vmem:[%s2044_s30 + $0x280] sm:$0xff]  ;;  %v552_v32 = vmul.f32 1.442695, %v217_v24 }
  0x71   : > { %v1409_v41 = vpop.eup %1408  ;;  %949 = vst [vmem:[%s2073_s17 + $0x158] sm:$0xff] %v1407_v38  ;;  %1434 = vpow2.f32 %v508_v30  ;;  %v219_v30 = vld [vmem:[%s2044_s30 + $0x288] sm:$0xff]  ;;  %v554_v35 = vmul.f32 1.442695, %v218_v27 }
  0x72   : > { %v1411_v44 = vpop.eup %1410  ;;  %950 = vst [vmem:[%s2073_s17 + $0x160] sm:$0xff] %v1409_v41  ;;  %1436 = vpow2.f32 %v510_v33  ;;  %v220_v33 = vld [vmem:[%s2044_s30 + $0x290] sm:$0xff]  ;;  %v556_v38 = vmul.f32 1.442695, %v219_v30 }
  0x73   : > { %v1413_v47 = vpop.eup %1412  ;;  %951 = vst [vmem:[%s2073_s17 + $0x168] sm:$0xff] %v1411_v44  ;;  %1438 = vpow2.f32 %v512_v36  ;;  %v221_v36 = vld [vmem:[%s2044_s30 + $0x298] sm:$0xff]  ;;  %v558_v41 = vmul.f32 1.442695, %v220_v33 }
  0x74   : > { %v1415_v50 = vpop.eup %1414  ;;  %952 = vst [vmem:[%s2073_s17 + $0x170] sm:$0xff] %v1413_v47  ;;  %1440 = vpow2.f32 %v514_v39  ;;  %v222_v39 = vld [vmem:[%s2044_s30 + $0x2a0] sm:$0xff]  ;;  %v560_v44 = vmul.f32 1.442695, %v221_v36 }
  0x75   : > { %v1417_v53 = vpop.eup %1416  ;;  %953 = vst [vmem:[%s2073_s17 + $0x178] sm:$0xff] %v1415_v50  ;;  %1442 = vpow2.f32 %v516_v42  ;;  %v223_v42 = vld [vmem:[%s2044_s30 + $0x2a8] sm:$0xff]  ;;  %v562_v47 = vmul.f32 1.442695, %v222_v39 }
  0x76   : > { %v1419_v56 = vpop.eup %1418  ;;  %954 = vst [vmem:[%s2073_s17 + $0x180] sm:$0xff] %v1417_v53  ;;  %1444 = vpow2.f32 %v518_v45  ;;  %v224_v45 = vld [vmem:[%s2044_s30 + $0x2b0] sm:$0xff]  ;;  %v564_v50 = vmul.f32 1.442695, %v223_v42 }
  0x77   : > { %v1421_v59 = vpop.eup %1420  ;;  %955 = vst [vmem:[%s2073_s17 + $0x188] sm:$0xff] %v1419_v56  ;;  %1446 = vpow2.f32 %v520_v48  ;;  %v225_v48 = vld [vmem:[%s2044_s30 + $0x2b8] sm:$0xff]  ;;  %v566_v53 = vmul.f32 1.442695, %v224_v45 }
  0x78   : > { %v1423_v62 = vpop.eup %1422  ;;  %956 = vst [vmem:[%s2073_s17 + $0x190] sm:$0xff] %v1421_v59  ;;  %1448 = vpow2.f32 %v522_v51  ;;  %v226_v51 = vld [vmem:[%s2044_s30 + $0x2c0] sm:$0xff]  ;;  %v568_v56 = vmul.f32 1.442695, %v225_v48 }
  0x79   : > { %v1425_v1 = vpop.eup %1424  ;;  %957 = vst [vmem:[%s2073_s17 + $0x198] sm:$0xff] %v1423_v62  ;;  %1450 = vpow2.f32 %v524_v54  ;;  %v227_v54 = vld [vmem:[%s2044_s30 + $0x2c8] sm:$0xff]  ;;  %v570_v59 = vmul.f32 1.442695, %v226_v51 }
  0x7a   : > { %v1427_v4 = vpop.eup %1426  ;;  %958 = vst [vmem:[%s2073_s17 + $0x1a0] sm:$0xff] %v1425_v1  ;;  %1452 = vpow2.f32 %v526_v57  ;;  %v228_v57 = vld [vmem:[%s2044_s30 + $0x2d0] sm:$0xff]  ;;  %v572_v62 = vmul.f32 1.442695, %v227_v54 }
  0x7b   : > { %v1429_v7 = vpop.eup %1428  ;;  %959 = vst [vmem:[%s2073_s17 + $0x1a8] sm:$0xff] %v1427_v4  ;;  %1454 = vpow2.f32 %v528_v60  ;;  %v229_v60 = vld [vmem:[%s2044_s30 + $0x2d8] sm:$0xff]  ;;  %v574_v1 = vmul.f32 1.442695, %v228_v57 }
  0x7c   : > { %v1431_v10 = vpop.eup %1430  ;;  %960 = vst [vmem:[%s2073_s17 + $0x1b0] sm:$0xff] %v1429_v7  ;;  %1456 = vpow2.f32 %v530_v63  ;;  %v230_v63 = vld [vmem:[%s2044_s30 + $0x2e0] sm:$0xff]  ;;  %v576_v4 = vmul.f32 1.442695, %v229_v60 }
  0x7d   : > { %v1433_v13 = vpop.eup %1432  ;;  %961 = vst [vmem:[%s2073_s17 + $0x1b8] sm:$0xff] %v1431_v10  ;;  %1458 = vpow2.f32 %v532_v2  ;;  %v231_v2 = vld [vmem:[%s2044_s30 + $0x2e8] sm:$0xff]  ;;  %v578_v7 = vmul.f32 1.442695, %v230_v63 }
  0x7e   : > { %v1435_v16 = vpop.eup %1434  ;;  %962 = vst [vmem:[%s2073_s17 + $0x1c0] sm:$0xff] %v1433_v13  ;;  %1460 = vpow2.f32 %v534_v5  ;;  %v232_v5 = vld [vmem:[%s2044_s30 + $0x2f0] sm:$0xff]  ;;  %v580_v10 = vmul.f32 1.442695, %v231_v2 }
  0x7f   : > { %v1437_v19 = vpop.eup %1436  ;;  %963 = vst [vmem:[%s2073_s17 + $0x1c8] sm:$0xff] %v1435_v16  ;;  %1462 = vpow2.f32 %v536_v8  ;;  %v233_v8 = vld [vmem:[%s2044_s30 + $0x2f8] sm:$0xff]  ;;  %v582_v13 = vmul.f32 1.442695, %v232_v5 }
  0x80   : > { %v1439_v22 = vpop.eup %1438  ;;  %964 = vst [vmem:[%s2073_s17 + $0x1d0] sm:$0xff] %v1437_v19  ;;  %1464 = vpow2.f32 %v538_v11  ;;  %v234_v11 = vld [vmem:[%s2044_s30 + $0x300] sm:$0xff]  ;;  %v584_v16 = vmul.f32 1.442695, %v233_v8 }
  0x81   : > { %v1441_v25 = vpop.eup %1440  ;;  %965 = vst [vmem:[%s2073_s17 + $0x1d8] sm:$0xff] %v1439_v22  ;;  %1466 = vpow2.f32 %v540_v14  ;;  %v235_v14 = vld [vmem:[%s2044_s30 + $0x308] sm:$0xff]  ;;  %v586_v19 = vmul.f32 1.442695, %v234_v11 }
  0x82   : > { %v1443_v28 = vpop.eup %1442  ;;  %966 = vst [vmem:[%s2073_s17 + $0x1e0] sm:$0xff] %v1441_v25  ;;  %1468 = vpow2.f32 %v542_v17  ;;  %v236_v17 = vld [vmem:[%s2044_s30 + $0x310] sm:$0xff]  ;;  %v588_v22 = vmul.f32 1.442695, %v235_v14 }
  0x83   : > { %v1445_v31 = vpop.eup %1444  ;;  %967 = vst [vmem:[%s2073_s17 + $0x1e8] sm:$0xff] %v1443_v28  ;;  %1470 = vpow2.f32 %v544_v20  ;;  %v237_v20 = vld [vmem:[%s2044_s30 + $0x318] sm:$0xff]  ;;  %v590_v25 = vmul.f32 1.442695, %v236_v17 }
  0x84   : > { %v1447_v34 = vpop.eup %1446  ;;  %968 = vst [vmem:[%s2073_s17 + $0x1f0] sm:$0xff] %v1445_v31  ;;  %1472 = vpow2.f32 %v546_v23  ;;  %v238_v23 = vld [vmem:[%s2044_s30 + $0x320] sm:$0xff]  ;;  %v592_v28 = vmul.f32 1.442695, %v237_v20 }
  0x85   : > { %v1449_v37 = vpop.eup %1448  ;;  %969 = vst [vmem:[%s2073_s17 + $0x1f8] sm:$0xff] %v1447_v34  ;;  %1474 = vpow2.f32 %v548_v26  ;;  %v239_v26 = vld [vmem:[%s2044_s30 + $0x328] sm:$0xff]  ;;  %v594_v31 = vmul.f32 1.442695, %v238_v23 }
  0x86   : > { %v1451_v40 = vpop.eup %1450  ;;  %970 = vst [vmem:[%s2073_s17 + $0x200] sm:$0xff] %v1449_v37  ;;  %1476 = vpow2.f32 %v550_v29  ;;  %v240_v29 = vld [vmem:[%s2044_s30 + $0x330] sm:$0xff]  ;;  %v596_v34 = vmul.f32 1.442695, %v239_v26 }
  0x87   : > { %v1453_v43 = vpop.eup %1452  ;;  %971 = vst [vmem:[%s2073_s17 + $0x208] sm:$0xff] %v1451_v40  ;;  %1478 = vpow2.f32 %v552_v32  ;;  %v241_v32 = vld [vmem:[%s2044_s30 + $0x338] sm:$0xff]  ;;  %v598_v37 = vmul.f32 1.442695, %v240_v29 }
  0x88   : > { %v1455_v46 = vpop.eup %1454  ;;  %972 = vst [vmem:[%s2073_s17 + $0x210] sm:$0xff] %v1453_v43  ;;  %1480 = vpow2.f32 %v554_v35  ;;  %v242_v35 = vld [vmem:[%s2044_s30 + $0x340] sm:$0xff]  ;;  %v600_v40 = vmul.f32 1.442695, %v241_v32 }
  0x89   : > { %v1457_v49 = vpop.eup %1456  ;;  %973 = vst [vmem:[%s2073_s17 + $0x218] sm:$0xff] %v1455_v46  ;;  %1482 = vpow2.f32 %v556_v38  ;;  %v243_v38 = vld [vmem:[%s2044_s30 + $0x348] sm:$0xff]  ;;  %v602_v43 = vmul.f32 1.442695, %v242_v35 }
  0x8a   : > { %v1459_v52 = vpop.eup %1458  ;;  %974 = vst [vmem:[%s2073_s17 + $0x220] sm:$0xff] %v1457_v49  ;;  %1484 = vpow2.f32 %v558_v41  ;;  %v244_v41 = vld [vmem:[%s2044_s30 + $0x350] sm:$0xff]  ;;  %v604_v46 = vmul.f32 1.442695, %v243_v38 }
  0x8b   : > { %v1461_v55 = vpop.eup %1460  ;;  %975 = vst [vmem:[%s2073_s17 + $0x228] sm:$0xff] %v1459_v52  ;;  %1486 = vpow2.f32 %v560_v44  ;;  %v245_v44 = vld [vmem:[%s2044_s30 + $0x358] sm:$0xff]  ;;  %v606_v49 = vmul.f32 1.442695, %v244_v41 }
  0x8c   : > { %v1463_v58 = vpop.eup %1462  ;;  %976 = vst [vmem:[%s2073_s17 + $0x230] sm:$0xff] %v1461_v55  ;;  %1488 = vpow2.f32 %v562_v47  ;;  %v246_v47 = vld [vmem:[%s2044_s30 + $0x360] sm:$0xff]  ;;  %v608_v52 = vmul.f32 1.442695, %v245_v44 }
  0x8d   : > { %v1465_v61 = vpop.eup %1464  ;;  %977 = vst [vmem:[%s2073_s17 + $0x238] sm:$0xff] %v1463_v58  ;;  %1490 = vpow2.f32 %v564_v50  ;;  %v247_v50 = vld [vmem:[%s2044_s30 + $0x368] sm:$0xff]  ;;  %v610_v55 = vmul.f32 1.442695, %v246_v47 }
  0x8e   : > { %v1467_v0 = vpop.eup %1466  ;;  %978 = vst [vmem:[%s2073_s17 + $0x240] sm:$0xff] %v1465_v61  ;;  %1492 = vpow2.f32 %v566_v53  ;;  %v248_v53 = vld [vmem:[%s2044_s30 + $0x370] sm:$0xff]  ;;  %v612_v58 = vmul.f32 1.442695, %v247_v50 }
  0x8f   : > { %v1469_v3 = vpop.eup %1468  ;;  %979 = vst [vmem:[%s2073_s17 + $0x248] sm:$0xff] %v1467_v0  ;;  %1494 = vpow2.f32 %v568_v56  ;;  %v249_v56 = vld [vmem:[%s2044_s30 + $0x378] sm:$0xff]  ;;  %v614_v61 = vmul.f32 1.442695, %v248_v53 }
  0x90   : > { %v1471_v6 = vpop.eup %1470  ;;  %980 = vst [vmem:[%s2073_s17 + $0x250] sm:$0xff] %v1469_v3  ;;  %1496 = vpow2.f32 %v570_v59  ;;  %v250_v59 = vld [vmem:[%s2044_s30 + $0x380] sm:$0xff]  ;;  %v616_v0 = vmul.f32 1.442695, %v249_v56 }
  0x91   : > { %v1473_v9 = vpop.eup %1472  ;;  %981 = vst [vmem:[%s2073_s17 + $0x258] sm:$0xff] %v1471_v6  ;;  %1498 = vpow2.f32 %v572_v62  ;;  %v251_v62 = vld [vmem:[%s2044_s30 + $0x388] sm:$0xff]  ;;  %v618_v3 = vmul.f32 1.442695, %v250_v59 }
  0x92   : > { %v1475_v12 = vpop.eup %1474  ;;  %982 = vst [vmem:[%s2073_s17 + $0x260] sm:$0xff] %v1473_v9  ;;  %1500 = vpow2.f32 %v574_v1  ;;  %v252_v1 = vld [vmem:[%s2044_s30 + $0x390] sm:$0xff]  ;;  %v620_v6 = vmul.f32 1.442695, %v251_v62 }
  0x93   : > { %v1477_v15 = vpop.eup %1476  ;;  %983 = vst [vmem:[%s2073_s17 + $0x268] sm:$0xff] %v1475_v12  ;;  %1502 = vpow2.f32 %v576_v4  ;;  %v253_v4 = vld [vmem:[%s2044_s30 + $0x398] sm:$0xff]  ;;  %v622_v9 = vmul.f32 1.442695, %v252_v1 }
  0x94   : > { %v1479_v18 = vpop.eup %1478  ;;  %984 = vst [vmem:[%s2073_s17 + $0x270] sm:$0xff] %v1477_v15  ;;  %1504 = vpow2.f32 %v578_v7  ;;  %v254_v7 = vld [vmem:[%s2044_s30 + $0x3a0] sm:$0xff]  ;;  %v624_v12 = vmul.f32 1.442695, %v253_v4 }
  0x95   : > { %v1481_v21 = vpop.eup %1480  ;;  %985 = vst [vmem:[%s2073_s17 + $0x278] sm:$0xff] %v1479_v18  ;;  %1506 = vpow2.f32 %v580_v10  ;;  %v255_v10 = vld [vmem:[%s2044_s30 + $0x3a8] sm:$0xff]  ;;  %v626_v15 = vmul.f32 1.442695, %v254_v7 }
  0x96   : > { %v1483_v24 = vpop.eup %1482  ;;  %986 = vst [vmem:[%s2073_s17 + $0x280] sm:$0xff] %v1481_v21  ;;  %1508 = vpow2.f32 %v582_v13  ;;  %v256_v13 = vld [vmem:[%s2044_s30 + $0x3b0] sm:$0xff]  ;;  %v628_v18 = vmul.f32 1.442695, %v255_v10 }
  0x97   : > { %v1485_v27 = vpop.eup %1484  ;;  %987 = vst [vmem:[%s2073_s17 + $0x288] sm:$0xff] %v1483_v24  ;;  %1510 = vpow2.f32 %v584_v16  ;;  %v257_v16 = vld [vmem:[%s2044_s30 + $0x3b8] sm:$0xff]  ;;  %v630_v21 = vmul.f32 1.442695, %v256_v13 }
  0x98   : > { %v1487_v30 = vpop.eup %1486  ;;  %988 = vst [vmem:[%s2073_s17 + $0x290] sm:$0xff] %v1485_v27  ;;  %1512 = vpow2.f32 %v586_v19  ;;  %v258_v19 = vld [vmem:[%s2044_s30 + $0x3c0] sm:$0xff]  ;;  %v632_v24 = vmul.f32 1.442695, %v257_v16 }
  0x99   : > { %v1489_v33 = vpop.eup %1488  ;;  %989 = vst [vmem:[%s2073_s17 + $0x298] sm:$0xff] %v1487_v30  ;;  %1514 = vpow2.f32 %v588_v22  ;;  %v259_v22 = vld [vmem:[%s2044_s30 + $0x3c8] sm:$0xff]  ;;  %v634_v27 = vmul.f32 1.442695, %v258_v19 }
  0x9a   : > { %v1491_v36 = vpop.eup %1490  ;;  %990 = vst [vmem:[%s2073_s17 + $0x2a0] sm:$0xff] %v1489_v33  ;;  %1516 = vpow2.f32 %v590_v25  ;;  %v260_v25 = vld [vmem:[%s2044_s30 + $0x3d0] sm:$0xff]  ;;  %v636_v30 = vmul.f32 1.442695, %v259_v22 }
  0x9b   : > { %v1493_v39 = vpop.eup %1492  ;;  %991 = vst [vmem:[%s2073_s17 + $0x2a8] sm:$0xff] %v1491_v36  ;;  %1518 = vpow2.f32 %v592_v28  ;;  %v261_v28 = vld [vmem:[%s2044_s30 + $0x3d8] sm:$0xff]  ;;  %v638_v33 = vmul.f32 1.442695, %v260_v25 }
  0x9c   : > { %v1495_v42 = vpop.eup %1494  ;;  %992 = vst [vmem:[%s2073_s17 + $0x2b0] sm:$0xff] %v1493_v39  ;;  %1520 = vpow2.f32 %v594_v31  ;;  %v262_v31 = vld [vmem:[%s2044_s30 + $0x3e0] sm:$0xff]  ;;  %v640_v36 = vmul.f32 1.442695, %v261_v28 }
  0x9d   : > { %v1497_v45 = vpop.eup %1496  ;;  %993 = vst [vmem:[%s2073_s17 + $0x2b8] sm:$0xff] %v1495_v42  ;;  %1522 = vpow2.f32 %v596_v34  ;;  %v263_v34 = vld [vmem:[%s2044_s30 + $0x3e8] sm:$0xff]  ;;  %v642_v39 = vmul.f32 1.442695, %v262_v31 }
  0x9e   : > { %v1499_v48 = vpop.eup %1498  ;;  %994 = vst [vmem:[%s2073_s17 + $0x2c0] sm:$0xff] %v1497_v45  ;;  %1524 = vpow2.f32 %v598_v37  ;;  %v264_v37 = vld [vmem:[%s2044_s30 + $0x3f0] sm:$0xff]  ;;  %v644_v42 = vmul.f32 1.442695, %v263_v34 }
  0x9f   : > { %v1501_v51 = vpop.eup %1500  ;;  %995 = vst [vmem:[%s2073_s17 + $0x2c8] sm:$0xff] %v1499_v48  ;;  %1526 = vpow2.f32 %v600_v40  ;;  %v265_v40 = vld [vmem:[%s2044_s30 + $0x3f8] sm:$0xff]  ;;  %v646_v45 = vmul.f32 1.442695, %v264_v37 }
  0xa0   : > { %v1503_v54 = vpop.eup %1502  ;;  %996 = vst [vmem:[%s2073_s17 + $0x2d0] sm:$0xff] %v1501_v51  ;;  %1528 = vpow2.f32 %v602_v43  ;;  %v266_v43 = vld [vmem:[%s2044_s30 + $0x400] sm:$0xff]  ;;  %v648_v48 = vmul.f32 1.442695, %v265_v40 }
  0xa1   : > { %v1505_v57 = vpop.eup %1504  ;;  %997 = vst [vmem:[%s2073_s17 + $0x2d8] sm:$0xff] %v1503_v54  ;;  %1530 = vpow2.f32 %v604_v46  ;;  %v267_v46 = vld [vmem:[%s2044_s30 + $0x408] sm:$0xff]  ;;  %v650_v51 = vmul.f32 1.442695, %v266_v43 }
  0xa2   : > { %v1507_v60 = vpop.eup %1506  ;;  %998 = vst [vmem:[%s2073_s17 + $0x2e0] sm:$0xff] %v1505_v57  ;;  %1532 = vpow2.f32 %v606_v49  ;;  %v268_v49 = vld [vmem:[%s2044_s30 + $0x410] sm:$0xff]  ;;  %v652_v54 = vmul.f32 1.442695, %v267_v46 }
  0xa3   : > { %v1509_v63 = vpop.eup %1508  ;;  %999 = vst [vmem:[%s2073_s17 + $0x2e8] sm:$0xff] %v1507_v60  ;;  %1534 = vpow2.f32 %v608_v52  ;;  %v269_v52 = vld [vmem:[%s2044_s30 + $0x418] sm:$0xff]  ;;  %v654_v57 = vmul.f32 1.442695, %v268_v49 }
  0xa4   : > { %v1511_v2 = vpop.eup %1510  ;;  %1000 = vst [vmem:[%s2073_s17 + $0x2f0] sm:$0xff] %v1509_v63  ;;  %1536 = vpow2.f32 %v610_v55  ;;  %v270_v55 = vld [vmem:[%s2044_s30 + $0x420] sm:$0xff]  ;;  %v656_v60 = vmul.f32 1.442695, %v269_v52 }
  0xa5   : > { %v1513_v5 = vpop.eup %1512  ;;  %1001 = vst [vmem:[%s2073_s17 + $0x2f8] sm:$0xff] %v1511_v2  ;;  %1538 = vpow2.f32 %v612_v58  ;;  %v271_v58 = vld [vmem:[%s2044_s30 + $0x428] sm:$0xff]  ;;  %v658_v63 = vmul.f32 1.442695, %v270_v55 }
  0xa6   : > { %v1515_v8 = vpop.eup %1514  ;;  %1002 = vst [vmem:[%s2073_s17 + $0x300] sm:$0xff] %v1513_v5  ;;  %1540 = vpow2.f32 %v614_v61  ;;  %v272_v61 = vld [vmem:[%s2044_s30 + $0x430] sm:$0xff]  ;;  %v660_v2 = vmul.f32 1.442695, %v271_v58 }
  0xa7   : > { %v1517_v11 = vpop.eup %1516  ;;  %1003 = vst [vmem:[%s2073_s17 + $0x308] sm:$0xff] %v1515_v8  ;;  %1542 = vpow2.f32 %v616_v0  ;;  %v273_v0 = vld [vmem:[%s2044_s30 + $0x438] sm:$0xff]  ;;  %v662_v5 = vmul.f32 1.442695, %v272_v61 }
  0xa8   : > { %v1519_v14 = vpop.eup %1518  ;;  %1004 = vst [vmem:[%s2073_s17 + $0x310] sm:$0xff] %v1517_v11  ;;  %1544 = vpow2.f32 %v618_v3  ;;  %v274_v3 = vld [vmem:[%s2044_s30 + $0x440] sm:$0xff]  ;;  %v664_v8 = vmul.f32 1.442695, %v273_v0 }
  0xa9   : > { %v1521_v17 = vpop.eup %1520  ;;  %1005 = vst [vmem:[%s2073_s17 + $0x318] sm:$0xff] %v1519_v14  ;;  %1546 = vpow2.f32 %v620_v6  ;;  %v275_v6 = vld [vmem:[%s2044_s30 + $0x448] sm:$0xff]  ;;  %v666_v11 = vmul.f32 1.442695, %v274_v3 }
  0xaa   : > { %v1523_v20 = vpop.eup %1522  ;;  %1006 = vst [vmem:[%s2073_s17 + $0x320] sm:$0xff] %v1521_v17  ;;  %1548 = vpow2.f32 %v622_v9  ;;  %v276_v9 = vld [vmem:[%s2044_s30 + $0x450] sm:$0xff]  ;;  %v668_v14 = vmul.f32 1.442695, %v275_v6 }
  0xab   : > { %v1525_v23 = vpop.eup %1524  ;;  %1007 = vst [vmem:[%s2073_s17 + $0x328] sm:$0xff] %v1523_v20  ;;  %1550 = vpow2.f32 %v624_v12  ;;  %v277_v12 = vld [vmem:[%s2044_s30 + $0x458] sm:$0xff]  ;;  %v670_v17 = vmul.f32 1.442695, %v276_v9 }
  0xac   : > { %v1527_v26 = vpop.eup %1526  ;;  %1008 = vst [vmem:[%s2073_s17 + $0x330] sm:$0xff] %v1525_v23  ;;  %1552 = vpow2.f32 %v626_v15  ;;  %v278_v15 = vld [vmem:[%s2044_s30 + $0x460] sm:$0xff]  ;;  %v672_v20 = vmul.f32 1.442695, %v277_v12 }
  0xad   : > { %v1529_v29 = vpop.eup %1528  ;;  %1009 = vst [vmem:[%s2073_s17 + $0x338] sm:$0xff] %v1527_v26  ;;  %1554 = vpow2.f32 %v628_v18  ;;  %v279_v18 = vld [vmem:[%s2044_s30 + $0x468] sm:$0xff]  ;;  %v674_v23 = vmul.f32 1.442695, %v278_v15 }
  0xae   : > { %v1531_v32 = vpop.eup %1530  ;;  %1010 = vst [vmem:[%s2073_s17 + $0x340] sm:$0xff] %v1529_v29  ;;  %1556 = vpow2.f32 %v630_v21  ;;  %v280_v21 = vld [vmem:[%s2044_s30 + $0x470] sm:$0xff]  ;;  %v676_v26 = vmul.f32 1.442695, %v279_v18 }
  0xaf   : > { %v1533_v35 = vpop.eup %1532  ;;  %1011 = vst [vmem:[%s2073_s17 + $0x348] sm:$0xff] %v1531_v32  ;;  %1558 = vpow2.f32 %v632_v24  ;;  %v281_v24 = vld [vmem:[%s2044_s30 + $0x478] sm:$0xff]  ;;  %v678_v29 = vmul.f32 1.442695, %v280_v21 }
  0xb0   : > { %v1535_v38 = vpop.eup %1534  ;;  %1012 = vst [vmem:[%s2073_s17 + $0x350] sm:$0xff] %v1533_v35  ;;  %1560 = vpow2.f32 %v634_v27  ;;  %v282_v27 = vld [vmem:[%s2044_s30 + $0x480] sm:$0xff]  ;;  %v680_v32 = vmul.f32 1.442695, %v281_v24 }
  0xb1   : > { %v1537_v41 = vpop.eup %1536  ;;  %1013 = vst [vmem:[%s2073_s17 + $0x358] sm:$0xff] %v1535_v38  ;;  %1562 = vpow2.f32 %v636_v30  ;;  %v283_v30 = vld [vmem:[%s2044_s30 + $0x488] sm:$0xff]  ;;  %v682_v35 = vmul.f32 1.442695, %v282_v27 }
  0xb2   : > { %v1539_v44 = vpop.eup %1538  ;;  %1014 = vst [vmem:[%s2073_s17 + $0x360] sm:$0xff] %v1537_v41  ;;  %1564 = vpow2.f32 %v638_v33  ;;  %v284_v33 = vld [vmem:[%s2044_s30 + $0x490] sm:$0xff]  ;;  %v684_v38 = vmul.f32 1.442695, %v283_v30 }
  0xb3   : > { %v1541_v47 = vpop.eup %1540  ;;  %1015 = vst [vmem:[%s2073_s17 + $0x368] sm:$0xff] %v1539_v44  ;;  %1566 = vpow2.f32 %v640_v36  ;;  %v285_v36 = vld [vmem:[%s2044_s30 + $0x498] sm:$0xff]  ;;  %v686_v41 = vmul.f32 1.442695, %v284_v33 }
  0xb4   : > { %v1543_v50 = vpop.eup %1542  ;;  %1016 = vst [vmem:[%s2073_s17 + $0x370] sm:$0xff] %v1541_v47  ;;  %1568 = vpow2.f32 %v642_v39  ;;  %v286_v39 = vld [vmem:[%s2044_s30 + $0x4a0] sm:$0xff]  ;;  %v688_v44 = vmul.f32 1.442695, %v285_v36 }
  0xb5   : > { %v1545_v53 = vpop.eup %1544  ;;  %1017 = vst [vmem:[%s2073_s17 + $0x378] sm:$0xff] %v1543_v50  ;;  %1570 = vpow2.f32 %v644_v42  ;;  %v287_v42 = vld [vmem:[%s2044_s30 + $0x4a8] sm:$0xff]  ;;  %v690_v47 = vmul.f32 1.442695, %v286_v39 }
  0xb6   : > { %v1547_v56 = vpop.eup %1546  ;;  %1018 = vst [vmem:[%s2073_s17 + $0x380] sm:$0xff] %v1545_v53  ;;  %1572 = vpow2.f32 %v646_v45  ;;  %v288_v45 = vld [vmem:[%s2044_s30 + $0x4b0] sm:$0xff]  ;;  %v692_v50 = vmul.f32 1.442695, %v287_v42 }
  0xb7   : > { %v1549_v59 = vpop.eup %1548  ;;  %1019 = vst [vmem:[%s2073_s17 + $0x388] sm:$0xff] %v1547_v56  ;;  %1574 = vpow2.f32 %v648_v48  ;;  %v289_v48 = vld [vmem:[%s2044_s30 + $0x4b8] sm:$0xff]  ;;  %v694_v53 = vmul.f32 1.442695, %v288_v45 }
  0xb8   : > { %v1551_v62 = vpop.eup %1550  ;;  %1020 = vst [vmem:[%s2073_s17 + $0x390] sm:$0xff] %v1549_v59  ;;  %1576 = vpow2.f32 %v650_v51  ;;  %v290_v51 = vld [vmem:[%s2044_s30 + $0x4c0] sm:$0xff]  ;;  %v696_v56 = vmul.f32 1.442695, %v289_v48 }
  0xb9   : > { %v1553_v1 = vpop.eup %1552  ;;  %1021 = vst [vmem:[%s2073_s17 + $0x398] sm:$0xff] %v1551_v62  ;;  %1578 = vpow2.f32 %v652_v54  ;;  %v291_v54 = vld [vmem:[%s2044_s30 + $0x4c8] sm:$0xff]  ;;  %v698_v59 = vmul.f32 1.442695, %v290_v51 }
  0xba   : > { %v1555_v4 = vpop.eup %1554  ;;  %1022 = vst [vmem:[%s2073_s17 + $0x3a0] sm:$0xff] %v1553_v1  ;;  %1580 = vpow2.f32 %v654_v57  ;;  %v292_v57 = vld [vmem:[%s2044_s30 + $0x4d0] sm:$0xff]  ;;  %v700_v62 = vmul.f32 1.442695, %v291_v54 }
  0xbb   : > { %v1557_v7 = vpop.eup %1556  ;;  %1023 = vst [vmem:[%s2073_s17 + $0x3a8] sm:$0xff] %v1555_v4  ;;  %1582 = vpow2.f32 %v656_v60  ;;  %v293_v60 = vld [vmem:[%s2044_s30 + $0x4d8] sm:$0xff]  ;;  %v702_v1 = vmul.f32 1.442695, %v292_v57 }
  0xbc   : > { %v1559_v10 = vpop.eup %1558  ;;  %1024 = vst [vmem:[%s2073_s17 + $0x3b0] sm:$0xff] %v1557_v7  ;;  %1584 = vpow2.f32 %v658_v63  ;;  %v294_v63 = vld [vmem:[%s2044_s30 + $0x4e0] sm:$0xff]  ;;  %v704_v4 = vmul.f32 1.442695, %v293_v60 }
  0xbd   : > { %v1561_v13 = vpop.eup %1560  ;;  %1025 = vst [vmem:[%s2073_s17 + $0x3b8] sm:$0xff] %v1559_v10  ;;  %1586 = vpow2.f32 %v660_v2  ;;  %v295_v2 = vld [vmem:[%s2044_s30 + $0x4e8] sm:$0xff]  ;;  %v706_v7 = vmul.f32 1.442695, %v294_v63 }
  0xbe   : > { %v1563_v16 = vpop.eup %1562  ;;  %1026 = vst [vmem:[%s2073_s17 + $0x3c0] sm:$0xff] %v1561_v13  ;;  %1588 = vpow2.f32 %v662_v5  ;;  %v296_v5 = vld [vmem:[%s2044_s30 + $0x4f0] sm:$0xff]  ;;  %v708_v10 = vmul.f32 1.442695, %v295_v2 }
  0xbf   : > { %v1565_v19 = vpop.eup %1564  ;;  %1027 = vst [vmem:[%s2073_s17 + $0x3c8] sm:$0xff] %v1563_v16  ;;  %1590 = vpow2.f32 %v664_v8  ;;  %v297_v8 = vld [vmem:[%s2044_s30 + $0x4f8] sm:$0xff]  ;;  %v710_v13 = vmul.f32 1.442695, %v296_v5 }
  0xc0   : > { %v1567_v22 = vpop.eup %1566  ;;  %1028 = vst [vmem:[%s2073_s17 + $0x3d0] sm:$0xff] %v1565_v19  ;;  %1592 = vpow2.f32 %v666_v11  ;;  %v298_v11 = vld [vmem:[%s2044_s30 + $0x500] sm:$0xff]  ;;  %v712_v16 = vmul.f32 1.442695, %v297_v8 }
  0xc1   : > { %v1569_v25 = vpop.eup %1568  ;;  %1029 = vst [vmem:[%s2073_s17 + $0x3d8] sm:$0xff] %v1567_v22  ;;  %1594 = vpow2.f32 %v668_v14  ;;  %v299_v14 = vld [vmem:[%s2044_s30 + $0x508] sm:$0xff]  ;;  %v714_v19 = vmul.f32 1.442695, %v298_v11 }
  0xc2   : > { %v1571_v28 = vpop.eup %1570  ;;  %1030 = vst [vmem:[%s2073_s17 + $0x3e0] sm:$0xff] %v1569_v25  ;;  %1596 = vpow2.f32 %v670_v17  ;;  %v300_v17 = vld [vmem:[%s2044_s30 + $0x510] sm:$0xff]  ;;  %v716_v22 = vmul.f32 1.442695, %v299_v14 }
  0xc3   : > { %v1573_v31 = vpop.eup %1572  ;;  %1031 = vst [vmem:[%s2073_s17 + $0x3e8] sm:$0xff] %v1571_v28  ;;  %1598 = vpow2.f32 %v672_v20  ;;  %v301_v20 = vld [vmem:[%s2044_s30 + $0x518] sm:$0xff]  ;;  %v718_v25 = vmul.f32 1.442695, %v300_v17 }
  0xc4   : > { %v1575_v34 = vpop.eup %1574  ;;  %1032 = vst [vmem:[%s2073_s17 + $0x3f0] sm:$0xff] %v1573_v31  ;;  %1600 = vpow2.f32 %v674_v23  ;;  %v302_v23 = vld [vmem:[%s2044_s30 + $0x520] sm:$0xff]  ;;  %v720_v28 = vmul.f32 1.442695, %v301_v20 }
  0xc5   : > { %v1577_v37 = vpop.eup %1576  ;;  %1033 = vst [vmem:[%s2073_s17 + $0x3f8] sm:$0xff] %v1575_v34  ;;  %1602 = vpow2.f32 %v676_v26  ;;  %v303_v26 = vld [vmem:[%s2044_s30 + $0x528] sm:$0xff]  ;;  %v722_v31 = vmul.f32 1.442695, %v302_v23 }
  0xc6   : > { %v1579_v40 = vpop.eup %1578  ;;  %1034 = vst [vmem:[%s2073_s17 + $0x400] sm:$0xff] %v1577_v37  ;;  %1604 = vpow2.f32 %v678_v29  ;;  %v304_v29 = vld [vmem:[%s2044_s30 + $0x530] sm:$0xff]  ;;  %v724_v34 = vmul.f32 1.442695, %v303_v26 }
  0xc7   : > { %v1581_v43 = vpop.eup %1580  ;;  %1035 = vst [vmem:[%s2073_s17 + $0x408] sm:$0xff] %v1579_v40  ;;  %1606 = vpow2.f32 %v680_v32  ;;  %v305_v32 = vld [vmem:[%s2044_s30 + $0x538] sm:$0xff]  ;;  %v726_v37 = vmul.f32 1.442695, %v304_v29 }
  0xc8   : > { %v1583_v46 = vpop.eup %1582  ;;  %1036 = vst [vmem:[%s2073_s17 + $0x410] sm:$0xff] %v1581_v43  ;;  %1608 = vpow2.f32 %v682_v35  ;;  %v306_v35 = vld [vmem:[%s2044_s30 + $0x540] sm:$0xff]  ;;  %v728_v40 = vmul.f32 1.442695, %v305_v32 }
  0xc9   : > { %v1585_v49 = vpop.eup %1584  ;;  %1037 = vst [vmem:[%s2073_s17 + $0x418] sm:$0xff] %v1583_v46  ;;  %1610 = vpow2.f32 %v684_v38  ;;  %v307_v38 = vld [vmem:[%s2044_s30 + $0x548] sm:$0xff]  ;;  %v730_v43 = vmul.f32 1.442695, %v306_v35 }
  0xca   : > { %v1587_v52 = vpop.eup %1586  ;;  %1038 = vst [vmem:[%s2073_s17 + $0x420] sm:$0xff] %v1585_v49  ;;  %1612 = vpow2.f32 %v686_v41  ;;  %v308_v41 = vld [vmem:[%s2044_s30 + $0x550] sm:$0xff]  ;;  %v732_v46 = vmul.f32 1.442695, %v307_v38 }
  0xcb   : > { %v1589_v55 = vpop.eup %1588  ;;  %1039 = vst [vmem:[%s2073_s17 + $0x428] sm:$0xff] %v1587_v52  ;;  %1614 = vpow2.f32 %v688_v44  ;;  %v309_v44 = vld [vmem:[%s2044_s30 + $0x558] sm:$0xff]  ;;  %v734_v49 = vmul.f32 1.442695, %v308_v41 }
  0xcc   : > { %v1591_v58 = vpop.eup %1590  ;;  %1040 = vst [vmem:[%s2073_s17 + $0x430] sm:$0xff] %v1589_v55  ;;  %1616 = vpow2.f32 %v690_v47  ;;  %v310_v47 = vld [vmem:[%s2044_s30 + $0x560] sm:$0xff]  ;;  %v736_v52 = vmul.f32 1.442695, %v309_v44 }
  0xcd   : > { %v1593_v61 = vpop.eup %1592  ;;  %1041 = vst [vmem:[%s2073_s17 + $0x438] sm:$0xff] %v1591_v58  ;;  %1618 = vpow2.f32 %v692_v50  ;;  %v311_v50 = vld [vmem:[%s2044_s30 + $0x568] sm:$0xff]  ;;  %v738_v55 = vmul.f32 1.442695, %v310_v47 }
  0xce   : > { %v1595_v0 = vpop.eup %1594  ;;  %1042 = vst [vmem:[%s2073_s17 + $0x440] sm:$0xff] %v1593_v61  ;;  %1620 = vpow2.f32 %v694_v53  ;;  %v312_v53 = vld [vmem:[%s2044_s30 + $0x570] sm:$0xff]  ;;  %v740_v58 = vmul.f32 1.442695, %v311_v50 }
  0xcf   : > { %v1597_v3 = vpop.eup %1596  ;;  %1043 = vst [vmem:[%s2073_s17 + $0x448] sm:$0xff] %v1595_v0  ;;  %1622 = vpow2.f32 %v696_v56  ;;  %v313_v56 = vld [vmem:[%s2044_s30 + $0x578] sm:$0xff]  ;;  %v742_v61 = vmul.f32 1.442695, %v312_v53 }
  0xd0   : > { %v1599_v6 = vpop.eup %1598  ;;  %1044 = vst [vmem:[%s2073_s17 + $0x450] sm:$0xff] %v1597_v3  ;;  %1624 = vpow2.f32 %v698_v59  ;;  %v314_v59 = vld [vmem:[%s2044_s30 + $0x580] sm:$0xff]  ;;  %v744_v0 = vmul.f32 1.442695, %v313_v56 }
  0xd1   : > { %v1601_v9 = vpop.eup %1600  ;;  %1045 = vst [vmem:[%s2073_s17 + $0x458] sm:$0xff] %v1599_v6  ;;  %1626 = vpow2.f32 %v700_v62  ;;  %v315_v62 = vld [vmem:[%s2044_s30 + $0x588] sm:$0xff]  ;;  %v746_v3 = vmul.f32 1.442695, %v314_v59 }
  0xd2   : > { %v1603_v12 = vpop.eup %1602  ;;  %1046 = vst [vmem:[%s2073_s17 + $0x460] sm:$0xff] %v1601_v9  ;;  %1628 = vpow2.f32 %v702_v1  ;;  %v316_v1 = vld [vmem:[%s2044_s30 + $0x590] sm:$0xff]  ;;  %v748_v6 = vmul.f32 1.442695, %v315_v62 }
  0xd3   : > { %v1605_v15 = vpop.eup %1604  ;;  %1047 = vst [vmem:[%s2073_s17 + $0x468] sm:$0xff] %v1603_v12  ;;  %1630 = vpow2.f32 %v704_v4  ;;  %v317_v4 = vld [vmem:[%s2044_s30 + $0x598] sm:$0xff]  ;;  %v750_v9 = vmul.f32 1.442695, %v316_v1 }
  0xd4   : > { %v1607_v18 = vpop.eup %1606  ;;  %1048 = vst [vmem:[%s2073_s17 + $0x470] sm:$0xff] %v1605_v15  ;;  %1632 = vpow2.f32 %v706_v7  ;;  %v318_v7 = vld [vmem:[%s2044_s30 + $0x5a0] sm:$0xff]  ;;  %v752_v12 = vmul.f32 1.442695, %v317_v4 }
  0xd5   : > { %v1609_v21 = vpop.eup %1608  ;;  %1049 = vst [vmem:[%s2073_s17 + $0x478] sm:$0xff] %v1607_v18  ;;  %1634 = vpow2.f32 %v708_v10  ;;  %v319_v10 = vld [vmem:[%s2044_s30 + $0x5a8] sm:$0xff]  ;;  %v754_v15 = vmul.f32 1.442695, %v318_v7 }
  0xd6   : > { %v1611_v24 = vpop.eup %1610  ;;  %1050 = vst [vmem:[%s2073_s17 + $0x480] sm:$0xff] %v1609_v21  ;;  %1636 = vpow2.f32 %v710_v13  ;;  %v320_v13 = vld [vmem:[%s2044_s30 + $0x5b0] sm:$0xff]  ;;  %v756_v18 = vmul.f32 1.442695, %v319_v10 }
  0xd7   : > { %v1613_v27 = vpop.eup %1612  ;;  %1051 = vst [vmem:[%s2073_s17 + $0x488] sm:$0xff] %v1611_v24  ;;  %1638 = vpow2.f32 %v712_v16  ;;  %v321_v16 = vld [vmem:[%s2044_s30 + $0x5b8] sm:$0xff]  ;;  %v758_v21 = vmul.f32 1.442695, %v320_v13 }
  0xd8   : > { %v1615_v30 = vpop.eup %1614  ;;  %1052 = vst [vmem:[%s2073_s17 + $0x490] sm:$0xff] %v1613_v27  ;;  %1640 = vpow2.f32 %v714_v19  ;;  %v322_v19 = vld [vmem:[%s2044_s30 + $0x5c0] sm:$0xff]  ;;  %v760_v24 = vmul.f32 1.442695, %v321_v16 }
  0xd9   : > { %v1617_v33 = vpop.eup %1616  ;;  %1053 = vst [vmem:[%s2073_s17 + $0x498] sm:$0xff] %v1615_v30  ;;  %1642 = vpow2.f32 %v716_v22  ;;  %v323_v22 = vld [vmem:[%s2044_s30 + $0x5c8] sm:$0xff]  ;;  %v762_v27 = vmul.f32 1.442695, %v322_v19 }
  0xda   : > { %v1619_v36 = vpop.eup %1618  ;;  %1054 = vst [vmem:[%s2073_s17 + $0x4a0] sm:$0xff] %v1617_v33  ;;  %1644 = vpow2.f32 %v718_v25  ;;  %v324_v25 = vld [vmem:[%s2044_s30 + $0x5d0] sm:$0xff]  ;;  %v764_v30 = vmul.f32 1.442695, %v323_v22 }
  0xdb   : > { %v1621_v39 = vpop.eup %1620  ;;  %1055 = vst [vmem:[%s2073_s17 + $0x4a8] sm:$0xff] %v1619_v36  ;;  %1646 = vpow2.f32 %v720_v28  ;;  %v325_v28 = vld [vmem:[%s2044_s30 + $0x5d8] sm:$0xff]  ;;  %v766_v33 = vmul.f32 1.442695, %v324_v25 }
  0xdc   : > { %v1623_v42 = vpop.eup %1622  ;;  %1056 = vst [vmem:[%s2073_s17 + $0x4b0] sm:$0xff] %v1621_v39  ;;  %1648 = vpow2.f32 %v722_v31  ;;  %v326_v31 = vld [vmem:[%s2044_s30 + $0x5e0] sm:$0xff]  ;;  %v768_v36 = vmul.f32 1.442695, %v325_v28 }
  0xdd   : > { %v1625_v45 = vpop.eup %1624  ;;  %1057 = vst [vmem:[%s2073_s17 + $0x4b8] sm:$0xff] %v1623_v42  ;;  %1650 = vpow2.f32 %v724_v34  ;;  %v327_v34 = vld [vmem:[%s2044_s30 + $0x5e8] sm:$0xff]  ;;  %v770_v39 = vmul.f32 1.442695, %v326_v31 }
  0xde   : > { %v1627_v48 = vpop.eup %1626  ;;  %1058 = vst [vmem:[%s2073_s17 + $0x4c0] sm:$0xff] %v1625_v45  ;;  %1652 = vpow2.f32 %v726_v37  ;;  %v328_v37 = vld [vmem:[%s2044_s30 + $0x5f0] sm:$0xff]  ;;  %v772_v42 = vmul.f32 1.442695, %v327_v34 }
  0xdf   : > { %v1629_v51 = vpop.eup %1628  ;;  %1059 = vst [vmem:[%s2073_s17 + $0x4c8] sm:$0xff] %v1627_v48  ;;  %1654 = vpow2.f32 %v728_v40  ;;  %v329_v40 = vld [vmem:[%s2044_s30 + $0x5f8] sm:$0xff]  ;;  %v774_v45 = vmul.f32 1.442695, %v328_v37 }
  0xe0   : > { %v1631_v54 = vpop.eup %1630  ;;  %1060 = vst [vmem:[%s2073_s17 + $0x4d0] sm:$0xff] %v1629_v51  ;;  %1656 = vpow2.f32 %v730_v43  ;;  %v330_v43 = vld [vmem:[%s2044_s30 + $0x600] sm:$0xff]  ;;  %v776_v48 = vmul.f32 1.442695, %v329_v40 }
  0xe1   : > { %v1633_v57 = vpop.eup %1632  ;;  %1061 = vst [vmem:[%s2073_s17 + $0x4d8] sm:$0xff] %v1631_v54  ;;  %1658 = vpow2.f32 %v732_v46  ;;  %v331_v46 = vld [vmem:[%s2044_s30 + $0x608] sm:$0xff]  ;;  %v778_v51 = vmul.f32 1.442695, %v330_v43 }
  0xe2   : > { %v1635_v60 = vpop.eup %1634  ;;  %1062 = vst [vmem:[%s2073_s17 + $0x4e0] sm:$0xff] %v1633_v57  ;;  %1660 = vpow2.f32 %v734_v49  ;;  %v332_v49 = vld [vmem:[%s2044_s30 + $0x610] sm:$0xff]  ;;  %v780_v54 = vmul.f32 1.442695, %v331_v46 }
  0xe3   : > { %v1637_v63 = vpop.eup %1636  ;;  %1063 = vst [vmem:[%s2073_s17 + $0x4e8] sm:$0xff] %v1635_v60  ;;  %1662 = vpow2.f32 %v736_v52  ;;  %v333_v52 = vld [vmem:[%s2044_s30 + $0x618] sm:$0xff]  ;;  %v782_v57 = vmul.f32 1.442695, %v332_v49 }
  0xe4   : > { %v1639_v2 = vpop.eup %1638  ;;  %1064 = vst [vmem:[%s2073_s17 + $0x4f0] sm:$0xff] %v1637_v63  ;;  %1664 = vpow2.f32 %v738_v55  ;;  %v334_v55 = vld [vmem:[%s2044_s30 + $0x620] sm:$0xff]  ;;  %v784_v60 = vmul.f32 1.442695, %v333_v52 }
  0xe5   : > { %v1641_v5 = vpop.eup %1640  ;;  %1065 = vst [vmem:[%s2073_s17 + $0x4f8] sm:$0xff] %v1639_v2  ;;  %1666 = vpow2.f32 %v740_v58  ;;  %v335_v58 = vld [vmem:[%s2044_s30 + $0x628] sm:$0xff]  ;;  %v786_v63 = vmul.f32 1.442695, %v334_v55 }
  0xe6   : > { %v1643_v8 = vpop.eup %1642  ;;  %1066 = vst [vmem:[%s2073_s17 + $0x500] sm:$0xff] %v1641_v5  ;;  %1668 = vpow2.f32 %v742_v61  ;;  %v336_v61 = vld [vmem:[%s2044_s30 + $0x630] sm:$0xff]  ;;  %v788_v2 = vmul.f32 1.442695, %v335_v58 }
  0xe7   : > { %v1645_v11 = vpop.eup %1644  ;;  %1067 = vst [vmem:[%s2073_s17 + $0x508] sm:$0xff] %v1643_v8  ;;  %1670 = vpow2.f32 %v744_v0  ;;  %v337_v0 = vld [vmem:[%s2044_s30 + $0x638] sm:$0xff]  ;;  %v790_v5 = vmul.f32 1.442695, %v336_v61 }
  0xe8   : > { %v1647_v14 = vpop.eup %1646  ;;  %1068 = vst [vmem:[%s2073_s17 + $0x510] sm:$0xff] %v1645_v11  ;;  %1672 = vpow2.f32 %v746_v3  ;;  %v338_v3 = vld [vmem:[%s2044_s30 + $0x640] sm:$0xff]  ;;  %v792_v8 = vmul.f32 1.442695, %v337_v0 }
  0xe9   : > { %v1649_v17 = vpop.eup %1648  ;;  %1069 = vst [vmem:[%s2073_s17 + $0x518] sm:$0xff] %v1647_v14  ;;  %1674 = vpow2.f32 %v748_v6  ;;  %v339_v6 = vld [vmem:[%s2044_s30 + $0x648] sm:$0xff]  ;;  %v794_v11 = vmul.f32 1.442695, %v338_v3 }
  0xea   : > { %v1651_v20 = vpop.eup %1650  ;;  %1070 = vst [vmem:[%s2073_s17 + $0x520] sm:$0xff] %v1649_v17  ;;  %1676 = vpow2.f32 %v750_v9  ;;  %v340_v9 = vld [vmem:[%s2044_s30 + $0x650] sm:$0xff]  ;;  %v796_v14 = vmul.f32 1.442695, %v339_v6 }
  0xeb   : > { %v1653_v23 = vpop.eup %1652  ;;  %1071 = vst [vmem:[%s2073_s17 + $0x528] sm:$0xff] %v1651_v20  ;;  %1678 = vpow2.f32 %v752_v12  ;;  %v341_v12 = vld [vmem:[%s2044_s30 + $0x658] sm:$0xff]  ;;  %v798_v17 = vmul.f32 1.442695, %v340_v9 }
  0xec   : > { %v1655_v26 = vpop.eup %1654  ;;  %1072 = vst [vmem:[%s2073_s17 + $0x530] sm:$0xff] %v1653_v23  ;;  %1680 = vpow2.f32 %v754_v15  ;;  %v342_v15 = vld [vmem:[%s2044_s30 + $0x660] sm:$0xff]  ;;  %v800_v20 = vmul.f32 1.442695, %v341_v12 }
  0xed   : > { %v1657_v29 = vpop.eup %1656  ;;  %1073 = vst [vmem:[%s2073_s17 + $0x538] sm:$0xff] %v1655_v26  ;;  %1682 = vpow2.f32 %v756_v18  ;;  %v343_v18 = vld [vmem:[%s2044_s30 + $0x668] sm:$0xff]  ;;  %v802_v23 = vmul.f32 1.442695, %v342_v15 }
  0xee   : > { %v1659_v32 = vpop.eup %1658  ;;  %1074 = vst [vmem:[%s2073_s17 + $0x540] sm:$0xff] %v1657_v29  ;;  %1684 = vpow2.f32 %v758_v21  ;;  %v344_v21 = vld [vmem:[%s2044_s30 + $0x670] sm:$0xff]  ;;  %v804_v26 = vmul.f32 1.442695, %v343_v18 }
  0xef   : > { %v1661_v35 = vpop.eup %1660  ;;  %1075 = vst [vmem:[%s2073_s17 + $0x548] sm:$0xff] %v1659_v32  ;;  %1686 = vpow2.f32 %v760_v24  ;;  %v345_v24 = vld [vmem:[%s2044_s30 + $0x678] sm:$0xff]  ;;  %v806_v29 = vmul.f32 1.442695, %v344_v21 }
  0xf0   : > { %v1663_v38 = vpop.eup %1662  ;;  %1076 = vst [vmem:[%s2073_s17 + $0x550] sm:$0xff] %v1661_v35  ;;  %1688 = vpow2.f32 %v762_v27  ;;  %v346_v27 = vld [vmem:[%s2044_s30 + $0x680] sm:$0xff]  ;;  %v808_v32 = vmul.f32 1.442695, %v345_v24 }
  0xf1   : > { %v1665_v41 = vpop.eup %1664  ;;  %1077 = vst [vmem:[%s2073_s17 + $0x558] sm:$0xff] %v1663_v38  ;;  %1690 = vpow2.f32 %v764_v30  ;;  %v347_v30 = vld [vmem:[%s2044_s30 + $0x688] sm:$0xff]  ;;  %v810_v35 = vmul.f32 1.442695, %v346_v27 }
  0xf2   : > { %v1667_v44 = vpop.eup %1666  ;;  %1078 = vst [vmem:[%s2073_s17 + $0x560] sm:$0xff] %v1665_v41  ;;  %1692 = vpow2.f32 %v766_v33  ;;  %v348_v33 = vld [vmem:[%s2044_s30 + $0x690] sm:$0xff]  ;;  %v812_v38 = vmul.f32 1.442695, %v347_v30 }
  0xf3   : > { %v1669_v47 = vpop.eup %1668  ;;  %1079 = vst [vmem:[%s2073_s17 + $0x568] sm:$0xff] %v1667_v44  ;;  %1694 = vpow2.f32 %v768_v36  ;;  %v349_v36 = vld [vmem:[%s2044_s30 + $0x698] sm:$0xff]  ;;  %v814_v41 = vmul.f32 1.442695, %v348_v33 }
  0xf4   : > { %v1671_v50 = vpop.eup %1670  ;;  %1080 = vst [vmem:[%s2073_s17 + $0x570] sm:$0xff] %v1669_v47  ;;  %1696 = vpow2.f32 %v770_v39  ;;  %v350_v39 = vld [vmem:[%s2044_s30 + $0x6a0] sm:$0xff]  ;;  %v816_v44 = vmul.f32 1.442695, %v349_v36 }
  0xf5   : > { %v1673_v53 = vpop.eup %1672  ;;  %1081 = vst [vmem:[%s2073_s17 + $0x578] sm:$0xff] %v1671_v50  ;;  %1698 = vpow2.f32 %v772_v42  ;;  %v351_v42 = vld [vmem:[%s2044_s30 + $0x6a8] sm:$0xff]  ;;  %v818_v47 = vmul.f32 1.442695, %v350_v39 }
  0xf6   : > { %v1675_v56 = vpop.eup %1674  ;;  %1082 = vst [vmem:[%s2073_s17 + $0x580] sm:$0xff] %v1673_v53  ;;  %1700 = vpow2.f32 %v774_v45  ;;  %v352_v45 = vld [vmem:[%s2044_s30 + $0x6b0] sm:$0xff]  ;;  %v820_v50 = vmul.f32 1.442695, %v351_v42 }
  0xf7   : > { %v1677_v59 = vpop.eup %1676  ;;  %1083 = vst [vmem:[%s2073_s17 + $0x588] sm:$0xff] %v1675_v56  ;;  %1702 = vpow2.f32 %v776_v48  ;;  %v353_v48 = vld [vmem:[%s2044_s30 + $0x6b8] sm:$0xff]  ;;  %v822_v53 = vmul.f32 1.442695, %v352_v45 }
  0xf8   : > { %v1679_v62 = vpop.eup %1678  ;;  %1084 = vst [vmem:[%s2073_s17 + $0x590] sm:$0xff] %v1677_v59  ;;  %1704 = vpow2.f32 %v778_v51  ;;  %v354_v51 = vld [vmem:[%s2044_s30 + $0x6c0] sm:$0xff]  ;;  %v824_v56 = vmul.f32 1.442695, %v353_v48 }
  0xf9   : > { %v1681_v1 = vpop.eup %1680  ;;  %1085 = vst [vmem:[%s2073_s17 + $0x598] sm:$0xff] %v1679_v62  ;;  %1706 = vpow2.f32 %v780_v54  ;;  %v355_v54 = vld [vmem:[%s2044_s30 + $0x6c8] sm:$0xff]  ;;  %v826_v59 = vmul.f32 1.442695, %v354_v51 }
  0xfa   : > { %v1683_v4 = vpop.eup %1682  ;;  %1086 = vst [vmem:[%s2073_s17 + $0x5a0] sm:$0xff] %v1681_v1  ;;  %1708 = vpow2.f32 %v782_v57  ;;  %v356_v57 = vld [vmem:[%s2044_s30 + $0x6d0] sm:$0xff]  ;;  %v828_v62 = vmul.f32 1.442695, %v355_v54 }
  0xfb   : > { %v1685_v7 = vpop.eup %1684  ;;  %1087 = vst [vmem:[%s2073_s17 + $0x5a8] sm:$0xff] %v1683_v4  ;;  %1710 = vpow2.f32 %v784_v60  ;;  %v357_v60 = vld [vmem:[%s2044_s30 + $0x6d8] sm:$0xff]  ;;  %v830_v1 = vmul.f32 1.442695, %v356_v57 }
  0xfc   : > { %v1687_v10 = vpop.eup %1686  ;;  %1088 = vst [vmem:[%s2073_s17 + $0x5b0] sm:$0xff] %v1685_v7  ;;  %1712 = vpow2.f32 %v786_v63  ;;  %v358_v63 = vld [vmem:[%s2044_s30 + $0x6e0] sm:$0xff]  ;;  %v832_v4 = vmul.f32 1.442695, %v357_v60 }
  0xfd   : > { %v1689_v13 = vpop.eup %1688  ;;  %1089 = vst [vmem:[%s2073_s17 + $0x5b8] sm:$0xff] %v1687_v10  ;;  %1714 = vpow2.f32 %v788_v2  ;;  %v359_v2 = vld [vmem:[%s2044_s30 + $0x6e8] sm:$0xff]  ;;  %v834_v7 = vmul.f32 1.442695, %v358_v63 }
  0xfe   : > { %v1691_v16 = vpop.eup %1690  ;;  %1090 = vst [vmem:[%s2073_s17 + $0x5c0] sm:$0xff] %v1689_v13  ;;  %1716 = vpow2.f32 %v790_v5  ;;  %v360_v5 = vld [vmem:[%s2044_s30 + $0x6f0] sm:$0xff]  ;;  %v836_v10 = vmul.f32 1.442695, %v359_v2 }
  0xff   : > { %v1693_v19 = vpop.eup %1692  ;;  %1091 = vst [vmem:[%s2073_s17 + $0x5c8] sm:$0xff] %v1691_v16  ;;  %1718 = vpow2.f32 %v792_v8  ;;  %v361_v8 = vld [vmem:[%s2044_s30 + $0x6f8] sm:$0xff]  ;;  %v838_v13 = vmul.f32 1.442695, %v360_v5 }
 0x100   : > { %v1695_v22 = vpop.eup %1694  ;;  %1092 = vst [vmem:[%s2073_s17 + $0x5d0] sm:$0xff] %v1693_v19  ;;  %1720 = vpow2.f32 %v794_v11  ;;  %v362_v11 = vld [vmem:[%s2044_s30 + $0x700] sm:$0xff]  ;;  %v840_v16 = vmul.f32 1.442695, %v361_v8 }
 0x101   : > { %v1697_v25 = vpop.eup %1696  ;;  %1093 = vst [vmem:[%s2073_s17 + $0x5d8] sm:$0xff] %v1695_v22  ;;  %1722 = vpow2.f32 %v796_v14  ;;  %v363_v14 = vld [vmem:[%s2044_s30 + $0x708] sm:$0xff]  ;;  %v842_v19 = vmul.f32 1.442695, %v362_v11 }
 0x102   : > { %v1699_v28 = vpop.eup %1698  ;;  %1094 = vst [vmem:[%s2073_s17 + $0x5e0] sm:$0xff] %v1697_v25  ;;  %1724 = vpow2.f32 %v798_v17  ;;  %v364_v17 = vld [vmem:[%s2044_s30 + $0x710] sm:$0xff]  ;;  %v844_v22 = vmul.f32 1.442695, %v363_v14 }
 0x103   : > { %v1701_v31 = vpop.eup %1700  ;;  %1095 = vst [vmem:[%s2073_s17 + $0x5e8] sm:$0xff] %v1699_v28  ;;  %1726 = vpow2.f32 %v800_v20  ;;  %v365_v20 = vld [vmem:[%s2044_s30 + $0x718] sm:$0xff]  ;;  %v846_v25 = vmul.f32 1.442695, %v364_v17 }
 0x104   : > { %v1703_v34 = vpop.eup %1702  ;;  %1096 = vst [vmem:[%s2073_s17 + $0x5f0] sm:$0xff] %v1701_v31  ;;  %1728 = vpow2.f32 %v802_v23  ;;  %v366_v23 = vld [vmem:[%s2044_s30 + $0x720] sm:$0xff]  ;;  %v848_v28 = vmul.f32 1.442695, %v365_v20 }
 0x105   : > { %v1705_v37 = vpop.eup %1704  ;;  %1097 = vst [vmem:[%s2073_s17 + $0x5f8] sm:$0xff] %v1703_v34  ;;  %1730 = vpow2.f32 %v804_v26  ;;  %v367_v26 = vld [vmem:[%s2044_s30 + $0x728] sm:$0xff]  ;;  %v850_v31 = vmul.f32 1.442695, %v366_v23 }
 0x106   : > { %v1707_v40 = vpop.eup %1706  ;;  %1098 = vst [vmem:[%s2073_s17 + $0x600] sm:$0xff] %v1705_v37  ;;  %1732 = vpow2.f32 %v806_v29  ;;  %v368_v29 = vld [vmem:[%s2044_s30 + $0x730] sm:$0xff]  ;;  %v852_v34 = vmul.f32 1.442695, %v367_v26 }
 0x107   : > { %v1709_v43 = vpop.eup %1708  ;;  %1099 = vst [vmem:[%s2073_s17 + $0x608] sm:$0xff] %v1707_v40  ;;  %1734 = vpow2.f32 %v808_v32  ;;  %v369_v32 = vld [vmem:[%s2044_s30 + $0x738] sm:$0xff]  ;;  %v854_v37 = vmul.f32 1.442695, %v368_v29 }
 0x108   : > { %v1711_v46 = vpop.eup %1710  ;;  %1100 = vst [vmem:[%s2073_s17 + $0x610] sm:$0xff] %v1709_v43  ;;  %1736 = vpow2.f32 %v810_v35  ;;  %v370_v35 = vld [vmem:[%s2044_s30 + $0x740] sm:$0xff]  ;;  %v856_v40 = vmul.f32 1.442695, %v369_v32 }
 0x109   : > { %v1713_v49 = vpop.eup %1712  ;;  %1101 = vst [vmem:[%s2073_s17 + $0x618] sm:$0xff] %v1711_v46  ;;  %1738 = vpow2.f32 %v812_v38  ;;  %v371_v38 = vld [vmem:[%s2044_s30 + $0x748] sm:$0xff]  ;;  %v858_v43 = vmul.f32 1.442695, %v370_v35 }
 0x10a   : > { %v1715_v52 = vpop.eup %1714  ;;  %1102 = vst [vmem:[%s2073_s17 + $0x620] sm:$0xff] %v1713_v49  ;;  %1740 = vpow2.f32 %v814_v41  ;;  %v372_v41 = vld [vmem:[%s2044_s30 + $0x750] sm:$0xff]  ;;  %v860_v46 = vmul.f32 1.442695, %v371_v38 }
 0x10b   : > { %v1717_v55 = vpop.eup %1716  ;;  %1103 = vst [vmem:[%s2073_s17 + $0x628] sm:$0xff] %v1715_v52  ;;  %1742 = vpow2.f32 %v816_v44  ;;  %v373_v44 = vld [vmem:[%s2044_s30 + $0x758] sm:$0xff]  ;;  %v862_v49 = vmul.f32 1.442695, %v372_v41 }
 0x10c   : > { %v1719_v58 = vpop.eup %1718  ;;  %1104 = vst [vmem:[%s2073_s17 + $0x630] sm:$0xff] %v1717_v55  ;;  %1744 = vpow2.f32 %v818_v47  ;;  %v374_v47 = vld [vmem:[%s2044_s30 + $0x760] sm:$0xff]  ;;  %v864_v52 = vmul.f32 1.442695, %v373_v44 }
 0x10d   : > { %v1721_v61 = vpop.eup %1720  ;;  %1105 = vst [vmem:[%s2073_s17 + $0x638] sm:$0xff] %v1719_v58  ;;  %1746 = vpow2.f32 %v820_v50  ;;  %v375_v50 = vld [vmem:[%s2044_s30 + $0x768] sm:$0xff]  ;;  %v866_v55 = vmul.f32 1.442695, %v374_v47 }
 0x10e   : > { %v1723_v0 = vpop.eup %1722  ;;  %1106 = vst [vmem:[%s2073_s17 + $0x640] sm:$0xff] %v1721_v61  ;;  %1748 = vpow2.f32 %v822_v53  ;;  %v376_v53 = vld [vmem:[%s2044_s30 + $0x770] sm:$0xff]  ;;  %v868_v58 = vmul.f32 1.442695, %v375_v50 }
 0x10f   : > { %v1725_v3 = vpop.eup %1724  ;;  %1107 = vst [vmem:[%s2073_s17 + $0x648] sm:$0xff] %v1723_v0  ;;  %1750 = vpow2.f32 %v824_v56  ;;  %v377_v56 = vld [vmem:[%s2044_s30 + $0x778] sm:$0xff]  ;;  %v870_v61 = vmul.f32 1.442695, %v376_v53 }
 0x110   : > { %v1727_v6 = vpop.eup %1726  ;;  %1108 = vst [vmem:[%s2073_s17 + $0x650] sm:$0xff] %v1725_v3  ;;  %1752 = vpow2.f32 %v826_v59  ;;  %v378_v59 = vld [vmem:[%s2044_s30 + $0x780] sm:$0xff]  ;;  %v872_v0 = vmul.f32 1.442695, %v377_v56 }
 0x111   : > { %v1729_v9 = vpop.eup %1728  ;;  %1109 = vst [vmem:[%s2073_s17 + $0x658] sm:$0xff] %v1727_v6  ;;  %1754 = vpow2.f32 %v828_v62  ;;  %v379_v62 = vld [vmem:[%s2044_s30 + $0x788] sm:$0xff]  ;;  %v874_v3 = vmul.f32 1.442695, %v378_v59 }
 0x112   : > { %v1731_v12 = vpop.eup %1730  ;;  %1110 = vst [vmem:[%s2073_s17 + $0x660] sm:$0xff] %v1729_v9  ;;  %1756 = vpow2.f32 %v830_v1  ;;  %v380_v1 = vld [vmem:[%s2044_s30 + $0x790] sm:$0xff]  ;;  %v876_v6 = vmul.f32 1.442695, %v379_v62 }
 0x113   : > { %v1733_v15 = vpop.eup %1732  ;;  %1111 = vst [vmem:[%s2073_s17 + $0x668] sm:$0xff] %v1731_v12  ;;  %1758 = vpow2.f32 %v832_v4  ;;  %v381_v4 = vld [vmem:[%s2044_s30 + $0x798] sm:$0xff]  ;;  %v878_v9 = vmul.f32 1.442695, %v380_v1 }
 0x114   : > { %v1735_v18 = vpop.eup %1734  ;;  %1112 = vst [vmem:[%s2073_s17 + $0x670] sm:$0xff] %v1733_v15  ;;  %1760 = vpow2.f32 %v834_v7  ;;  %v382_v7 = vld [vmem:[%s2044_s30 + $0x7a0] sm:$0xff]  ;;  %v880_v12 = vmul.f32 1.442695, %v381_v4 }
 0x115   : > { %v1737_v21 = vpop.eup %1736  ;;  %1113 = vst [vmem:[%s2073_s17 + $0x678] sm:$0xff] %v1735_v18  ;;  %1762 = vpow2.f32 %v836_v10  ;;  %v383_v10 = vld [vmem:[%s2044_s30 + $0x7a8] sm:$0xff]  ;;  %v882_v15 = vmul.f32 1.442695, %v382_v7 }
 0x116   : > { %v1739_v24 = vpop.eup %1738  ;;  %1114 = vst [vmem:[%s2073_s17 + $0x680] sm:$0xff] %v1737_v21  ;;  %1764 = vpow2.f32 %v838_v13  ;;  %v384_v13 = vld [vmem:[%s2044_s30 + $0x7b0] sm:$0xff]  ;;  %v884_v18 = vmul.f32 1.442695, %v383_v10 }
 0x117   : > { %v1741_v27 = vpop.eup %1740  ;;  %1115 = vst [vmem:[%s2073_s17 + $0x688] sm:$0xff] %v1739_v24  ;;  %1766 = vpow2.f32 %v840_v16  ;;  %v385_v16 = vld [vmem:[%s2044_s30 + $0x7b8] sm:$0xff]  ;;  %v886_v21 = vmul.f32 1.442695, %v384_v13 }
 0x118   : > { %v1743_v30 = vpop.eup %1742  ;;  %1116 = vst [vmem:[%s2073_s17 + $0x690] sm:$0xff] %v1741_v27  ;;  %1768 = vpow2.f32 %v842_v19  ;;  %v386_v19 = vld [vmem:[%s2044_s30 + $0x7c0] sm:$0xff]  ;;  %v888_v24 = vmul.f32 1.442695, %v385_v16 }
 0x119   : > { %v1745_v33 = vpop.eup %1744  ;;  %1117 = vst [vmem:[%s2073_s17 + $0x698] sm:$0xff] %v1743_v30  ;;  %1770 = vpow2.f32 %v844_v22  ;;  %v387_v22 = vld [vmem:[%s2044_s30 + $0x7c8] sm:$0xff]  ;;  %v890_v27 = vmul.f32 1.442695, %v386_v19 }
 0x11a   : > { %v1747_v36 = vpop.eup %1746  ;;  %1118 = vst [vmem:[%s2073_s17 + $0x6a0] sm:$0xff] %v1745_v33  ;;  %1772 = vpow2.f32 %v846_v25  ;;  %v388_v25 = vld [vmem:[%s2044_s30 + $0x7d0] sm:$0xff]  ;;  %v892_v30 = vmul.f32 1.442695, %v387_v22 }
 0x11b   : > { %v1749_v39 = vpop.eup %1748  ;;  %1119 = vst [vmem:[%s2073_s17 + $0x6a8] sm:$0xff] %v1747_v36  ;;  %1774 = vpow2.f32 %v848_v28  ;;  %v389_v28 = vld [vmem:[%s2044_s30 + $0x7d8] sm:$0xff]  ;;  %v894_v33 = vmul.f32 1.442695, %v388_v25 }
 0x11c   : > { %v1751_v42 = vpop.eup %1750  ;;  %1120 = vst [vmem:[%s2073_s17 + $0x6b0] sm:$0xff] %v1749_v39  ;;  %1776 = vpow2.f32 %v850_v31  ;;  %v390_v31 = vld [vmem:[%s2044_s30 + $0x7e0] sm:$0xff]  ;;  %v896_v36 = vmul.f32 1.442695, %v389_v28 }
 0x11d   : > { %v1753_v45 = vpop.eup %1752  ;;  %1121 = vst [vmem:[%s2073_s17 + $0x6b8] sm:$0xff] %v1751_v42  ;;  %1778 = vpow2.f32 %v852_v34  ;;  %v391_v34 = vld [vmem:[%s2044_s30 + $0x7e8] sm:$0xff]  ;;  %v898_v39 = vmul.f32 1.442695, %v390_v31 }
 0x11e   : > { %v1755_v48 = vpop.eup %1754  ;;  %1122 = vst [vmem:[%s2073_s17 + $0x6c0] sm:$0xff] %v1753_v45  ;;  %1780 = vpow2.f32 %v854_v37  ;;  %v392_v37 = vld [vmem:[%s2044_s30 + $0x7f0] sm:$0xff]  ;;  %v900_v42 = vmul.f32 1.442695, %v391_v34 }
 0x11f   : > { %v1757_v51 = vpop.eup %1756  ;;  %1123 = vst [vmem:[%s2073_s17 + $0x6c8] sm:$0xff] %v1755_v48  ;;  %1782 = vpow2.f32 %v856_v40  ;;  %v393_v40 = vld [vmem:[%s2044_s30 + $0x7f8] sm:$0xff]  ;;  %v902_v44 = vmul.f32 1.442695, %v392_v37 }
 0x120   : > { %v1759_v54 = vpop.eup %1758  ;;  %1124 = vst [vmem:[%s2073_s17 + $0x6d0] sm:$0xff] %v1757_v51  ;;  %1784 = vpow2.f32 %v858_v43 }
 0x121   : > { %v1761_v57 = vpop.eup %1760  ;;  %1125 = vst [vmem:[%s2073_s17 + $0x6d8] sm:$0xff] %v1759_v54  ;;  %1786 = vpow2.f32 %v860_v46  ;;  %v904_v46 = vmul.f32 1.442695, %v393_v40 }
 0x122   : > { %v1763_v60 = vpop.eup %1762  ;;  %1126 = vst [vmem:[%s2073_s17 + $0x6e0] sm:$0xff] %v1761_v57  ;;  %1788 = vpow2.f32 %v862_v49 }
 0x123   : > { %v1765_v63 = vpop.eup %1764  ;;  %1127 = vst [vmem:[%s2073_s17 + $0x6e8] sm:$0xff] %v1763_v60  ;;  %1790 = vpow2.f32 %v864_v52 }
 0x124   : > { %v1767_v2 = vpop.eup %1766  ;;  %1128 = vst [vmem:[%s2073_s17 + $0x6f0] sm:$0xff] %v1765_v63  ;;  %1792 = vpow2.f32 %v866_v55 }
 0x125   : > { %v1769_v5 = vpop.eup %1768  ;;  %1129 = vst [vmem:[%s2073_s17 + $0x6f8] sm:$0xff] %v1767_v2  ;;  %1794 = vpow2.f32 %v868_v58 }
 0x126   : > { %v1771_v8 = vpop.eup %1770  ;;  %1130 = vst [vmem:[%s2073_s17 + $0x700] sm:$0xff] %v1769_v5  ;;  %1796 = vpow2.f32 %v870_v61 }
 0x127   : > { %v1773_v11 = vpop.eup %1772  ;;  %1131 = vst [vmem:[%s2073_s17 + $0x708] sm:$0xff] %v1771_v8  ;;  %1798 = vpow2.f32 %v872_v0 }
 0x128   : > { %v1775_v14 = vpop.eup %1774  ;;  %1132 = vst [vmem:[%s2073_s17 + $0x710] sm:$0xff] %v1773_v11  ;;  %1800 = vpow2.f32 %v874_v3 }
 0x129   : > { %v1777_v17 = vpop.eup %1776  ;;  %1133 = vst [vmem:[%s2073_s17 + $0x718] sm:$0xff] %v1775_v14  ;;  %1802 = vpow2.f32 %v876_v6 }
 0x12a   : > { %v1779_v20 = vpop.eup %1778  ;;  %1134 = vst [vmem:[%s2073_s17 + $0x720] sm:$0xff] %v1777_v17  ;;  %1804 = vpow2.f32 %v878_v9 }
 0x12b   : > { %v1781_v23 = vpop.eup %1780  ;;  %1135 = vst [vmem:[%s2073_s17 + $0x728] sm:$0xff] %v1779_v20  ;;  %1806 = vpow2.f32 %v880_v12 }
 0x12c   : > { %v1783_v26 = vpop.eup %1782  ;;  %1136 = vst [vmem:[%s2073_s17 + $0x730] sm:$0xff] %v1781_v23  ;;  %1808 = vpow2.f32 %v882_v15 }
 0x12d   : > { %v1785_v29 = vpop.eup %1784  ;;  %1137 = vst [vmem:[%s2073_s17 + $0x738] sm:$0xff] %v1783_v26  ;;  %1810 = vpow2.f32 %v884_v18 }
 0x12e   : > { %v1787_v32 = vpop.eup %1786  ;;  %1138 = vst [vmem:[%s2073_s17 + $0x740] sm:$0xff] %v1785_v29  ;;  %1812 = vpow2.f32 %v886_v21 }
 0x12f   : > { %v1789_v35 = vpop.eup %1788  ;;  %1139 = vst [vmem:[%s2073_s17 + $0x748] sm:$0xff] %v1787_v32  ;;  %1814 = vpow2.f32 %v888_v24 }
 0x130   : > { %v1791_v38 = vpop.eup %1790  ;;  %1140 = vst [vmem:[%s2073_s17 + $0x750] sm:$0xff] %v1789_v35  ;;  %1816 = vpow2.f32 %v890_v27 }
 0x131   : > { %v1793_v41 = vpop.eup %1792  ;;  %1141 = vst [vmem:[%s2073_s17 + $0x758] sm:$0xff] %v1791_v38  ;;  %1818 = vpow2.f32 %v892_v30 }
 0x132   : > { %v1795_v43 = vpop.eup %1794  ;;  %1142 = vst [vmem:[%s2073_s17 + $0x760] sm:$0xff] %v1793_v41  ;;  %1820 = vpow2.f32 %v894_v33 }
 0x133   : > { %v1797_v45 = vpop.eup %1796  ;;  %1143 = vst [vmem:[%s2073_s17 + $0x768] sm:$0xff] %v1795_v43  ;;  %1822 = vpow2.f32 %v896_v36 }
 0x134   : > { %v1799_v47 = vpop.eup %1798  ;;  %1144 = vst [vmem:[%s2073_s17 + $0x770] sm:$0xff] %v1797_v45  ;;  %1824 = vpow2.f32 %v898_v39 }
 0x135   : > { %v1801_v48 = vpop.eup %1800  ;;  %1145 = vst [vmem:[%s2073_s17 + $0x778] sm:$0xff] %v1799_v47  ;;  %1826 = vpow2.f32 %v900_v42 }
 0x136   : > { %v1803_v49 = vpop.eup %1802  ;;  %1146 = vst [vmem:[%s2073_s17 + $0x780] sm:$0xff] %v1801_v48  ;;  %1828 = vpow2.f32 %v902_v44 }
 0x137   : > { %v1805_v50 = vpop.eup %1804  ;;  %1147 = vst [vmem:[%s2073_s17 + $0x788] sm:$0xff] %v1803_v49  ;;  %1830 = vpow2.f32 %v904_v46 }
 0x138   : > { %v1807_v51 = vpop.eup %1806  ;;  %1148 = vst [vmem:[%s2073_s17 + $0x790] sm:$0xff] %v1805_v50 }
 0x139   : > { %v1809_v52 = vpop.eup %1808  ;;  %1149 = vst [vmem:[%s2073_s17 + $0x798] sm:$0xff] %v1807_v51 }
 0x13a   : > { %v1811_v53 = vpop.eup %1810  ;;  %1150 = vst [vmem:[%s2073_s17 + $0x7a0] sm:$0xff] %v1809_v52 }
 0x13b   : > { %v1813_v54 = vpop.eup %1812  ;;  %1151 = vst [vmem:[%s2073_s17 + $0x7a8] sm:$0xff] %v1811_v53 }
 0x13c   : > { %v1815_v55 = vpop.eup %1814  ;;  %1152 = vst [vmem:[%s2073_s17 + $0x7b0] sm:$0xff] %v1813_v54 }
 0x13d   : > { %v1817_v56 = vpop.eup %1816  ;;  %1153 = vst [vmem:[%s2073_s17 + $0x7b8] sm:$0xff] %v1815_v55 }
 0x13e   : > { %v1819_v57 = vpop.eup %1818  ;;  %1154 = vst [vmem:[%s2073_s17 + $0x7c0] sm:$0xff] %v1817_v56 }
 0x13f   : > { %v1821_v58 = vpop.eup %1820  ;;  %1155 = vst [vmem:[%s2073_s17 + $0x7c8] sm:$0xff] %v1819_v57 }
 0x140   : > { %v1823_v59 = vpop.eup %1822  ;;  %1156 = vst [vmem:[%s2073_s17 + $0x7d0] sm:$0xff] %v1821_v58 }
 0x141   : > { %v1825_v60 = vpop.eup %1824  ;;  %1157 = vst [vmem:[%s2073_s17 + $0x7d8] sm:$0xff] %v1823_v59 }
 0x142   : > { %v1827_v61 = vpop.eup %1826  ;;  %1158 = vst [vmem:[%s2073_s17 + $0x7e0] sm:$0xff] %v1825_v60 }
 0x143   : > { %v1829_v62 = vpop.eup %1828  ;;  %1159 = vst [vmem:[%s2073_s17 + $0x7e8] sm:$0xff] %v1827_v61 }
 0x144   : > { %v1831_v63 = vpop.eup %1830  ;;  %1160 = vst [vmem:[%s2073_s17 + $0x7f0] sm:$0xff] %v1829_v62 }
 0x145   : > { %1161 = vst [vmem:[%s2073_s17 + $0x7f8] sm:$0xff] %v1831_v63 }
 0x146   : > { %1873 = shalt.err (!%p1870_p9)
}
 0x147   : > { %s1874_s13 = scalar_lea.hbm %s2568_s2, 32768  ;;  %s1878_s20 = scalar_lea.hbm %s2616_s1, 131072 }
 0x148   : > { %p1875_p13 = scmp.ne.s32.totalorder %s2568_s2, %s1874_s13  ;;  %p1879_p2 = scmp.lt.s32.totalorder %s2568_s2, %s2616_s1 }
 0x149   : > { %p1880_p3 = scmp.lt.s32.totalorder %s1878_s20, %s1874_s13 }
 0x14a   : > { %p1876_p1 = pnand %p1875_p13, %p2625_p11 }
 0x14b   : > { %p1881_p6 = por %p1880_p3, %p1879_p2 }
 0x14c   : > { %p1877_p0 = pneg %p1876_p1 }
 0x14e   : > { %p1882_p10 = pnand %p1881_p6, %p1877_p0 }
 0x150   : > { %1885 = shalt.err (!%p1882_p10)
}
 0x151   : > { %s1930_s24 = smov 4096   ;;  %s1931_s26 = smov 256  }
 0x152   : > { %1272 = dma.vmem_to_hbm [thread:$0]  (%p2625_p11), %s2571_s27, 32768, %s2568_s2, %s1163_s10, %s1930_s24, %s1930_s24, %s1931_s26  }
 0x153 PF: > { %p1283_p12 = scmp.ge.s32.totalorder %s1924_s9, 2  ;;  %s1192_s30 = sand.u32 1, %s1912_s6  }
 0x154   : > { %p2626_p4 = scmp.ne.s32.totalorder %s2622_s19, 0  ;;  %s1193_s17 = scalar_lea.sflag [#allocation4], %s1192_s30 }
 0x156   : > { %p1279_p5 = pnand %p1283_p12, %p2626_p4 }
 0x158   : > { %p1280_p7 = pneg %p1279_p5 }
 0x15a   : > { %1907 = dma.done.wait (%p1280_p7), %s1193_s17, 32768  }
 0x15b   : > { %1909 = vsyncadd (%p1280_p7), %s1193_s17, 4294934528  ;;  %p14_p8 = scmp.ge.s32.totalorder %s1967_s12, 6   ;;  %s2627_s6 = smov %s1916_s7 }
 0x15c   : > { %s2628_s7 = smov %s1920_s8  ;;  %s2629_s8 = smov %s1979_s15 }
 0x15d   : > { %s2630_s9 = smov %s1967_s12  ;;  %16 = sbr.rel (!%p14_p8) target bundleno = 5 (0x5), region = 69 }
 0x162   :  { %1198 = vsyncpa [#allocation3], 1 }
 0x163   :  { %1200 = vsyncpa [#allocation3 + $0x1], 1 }
 0x164   :  { %1201 = vsyncpa [#allocation4], 1 }
 0x165   :  { %1203 = vsyncpa [#allocation4 + $0x1], 1 }

</bundles_post_ra>
